<compile_context>
chip_gen: v7x
topology: tpu7x:2x2x1
jax: 0.10.0
libtpu: 0.0.40
codegen_flags: <defaults>
</compile_context>

<pallas_src>
import functools

import jax
import jax.numpy as jnp
from jax import lax
from jax.experimental import pallas as pl
from jax.experimental.pallas import tpu as pltpu

_LN_EPS = 1e-5
_GELU_C = 0.7978845608028654  # sqrt(2/pi)
_NEG_INF = -1e30              # large finite negative (safe with max-subtract)


# --------------------------------------------------------------------------
# in-kernel helpers (f32 elementwise math)
# --------------------------------------------------------------------------
def _layernorm(x, g, b):
    mean = jnp.mean(x, axis=-1, keepdims=True)
    var = jnp.mean((x - mean) ** 2, axis=-1, keepdims=True)
    return (x - mean) * lax.rsqrt(var + _LN_EPS) * g + b


def _gelu_new(x):
    return 0.5 * x * (1.0 + jnp.tanh(_GELU_C * (x + 0.044715 * x * x * x)))


def _bf16(x):
    return x.astype(jnp.bfloat16)


# --------------------------------------------------------------------------
# Fused attention block:  x + attn_proj( MHA( LN1(x) ) )
# one batch element per grid step; weights resident (constant index_map)
# --------------------------------------------------------------------------
def _attn_block_kernel(x_ref, g_ref, b_ref, wqkv_ref, bqkv_ref,
                       wproj_ref, bproj_ref, o_ref, attn_scratch,
                       *, n_head, head_dim, scale):
    x = x_ref[0]                                   # (S, H), f32
    S, H = x.shape

    a = _layernorm(x, g_ref[...], b_ref[...])
    qkv = jnp.dot(_bf16(a), _bf16(wqkv_ref[...]),
                  preferred_element_type=jnp.float32) + bqkv_ref[...]  # (S, 3H)

    # causal mask built once per kernel invocation
    row = lax.broadcasted_iota(jnp.int32, (S, S), 0)
    col = lax.broadcasted_iota(jnp.int32, (S, S), 1)
    causal = col <= row

    for h in range(n_head):                        # static unroll over heads
        lo = h * head_dim
        q = qkv[:, lo:lo + head_dim] * scale                       # fold scale into q
        k = qkv[:, H + lo:H + lo + head_dim]
        v = qkv[:, 2 * H + lo:2 * H + lo + head_dim]
        # q @ k^T without materialising a transpose
        s = lax.dot_general(_bf16(q), _bf16(k),
                            dimension_numbers=(((1,), (1,)), ((), ())),
                            preferred_element_type=jnp.float32)     # (S, S)
        s = jnp.where(causal, s, _NEG_INF)
        s = s - jnp.max(s, axis=-1, keepdims=True)
        p = jnp.exp(s)
        p = p / jnp.sum(p, axis=-1, keepdims=True)                  # softmax (f32)
        attn_scratch[:, lo:lo + head_dim] = jnp.dot(
            _bf16(p), _bf16(v), preferred_element_type=jnp.float32)

    attn = attn_scratch[...]                                        # (S, H)
    proj = jnp.dot(_bf16(attn), _bf16(wproj_ref[...]),
                   preferred_element_type=jnp.float32) + bproj_ref[...]
    o_ref[0] = x + proj                                             # fused residual


def attn_block(x, layer, *, n_head):
    B, S, H = x.shape
    hd = H // n_head
    kern = functools.partial(_attn_block_kernel, n_head=n_head,
                             head_dim=hd, scale=1.0 / (hd ** 0.5))
    const = lambda b: (0, 0)
    return pl.pallas_call(
        kern,
        out_shape=jax.ShapeDtypeStruct((B, S, H), jnp.float32),
        grid=(B,),
        in_specs=[
            pl.BlockSpec((1, S, H), lambda b: (b, 0, 0)),
            pl.BlockSpec((1, H), const),
            pl.BlockSpec((1, H), const),
            pl.BlockSpec((H, 3 * H), const),
            pl.BlockSpec((1, 3 * H), const),
            pl.BlockSpec((H, H), const),
            pl.BlockSpec((1, H), const),
        ],
        out_specs=pl.BlockSpec((1, S, H), lambda b: (b, 0, 0)),
        scratch_shapes=[pltpu.VMEM((S, H), jnp.float32)],
        compiler_params=pltpu.CompilerParams(dimension_semantics=("parallel",)),
    )(x,
      layer["ln1_g"].reshape(1, H), layer["ln1_b"].reshape(1, H),
      layer["attn_w"], layer["attn_b"].reshape(1, 3 * H),
      layer["attn_proj_w"], layer["attn_proj_b"].reshape(1, H))


# --------------------------------------------------------------------------
# Fused MLP block:  x + proj( gelu_new( fc( LN2(x) ) ) )
# --------------------------------------------------------------------------
def _mlp_block_kernel(x_ref, g_ref, b_ref, wfc_ref, bfc_ref,
                      wproj_ref, bproj_ref, o_ref):
    x = x_ref[0]                                   # (S, H), f32
    m = _layernorm(x, g_ref[...], b_ref[...])
    h = jnp.dot(_bf16(m), _bf16(wfc_ref[...]),
                preferred_element_type=jnp.float32) + bfc_ref[...]
    h = _gelu_new(h)                               # f32 elementwise
    proj = jnp.dot(_bf16(h), _bf16(wproj_ref[...]),
                   preferred_element_type=jnp.float32) + bproj_ref[...]
    o_ref[0] = x + proj                            # fused residual


def mlp_block(x, layer):
    B, S, H = x.shape
    const = lambda b: (0, 0)
    return pl.pallas_call(
        _mlp_block_kernel,
        out_shape=jax.ShapeDtypeStruct((B, S, H), jnp.float32),
        grid=(B,),
        in_specs=[
            pl.BlockSpec((1, S, H), lambda b: (b, 0, 0)),
            pl.BlockSpec((1, H), const),
            pl.BlockSpec((1, H), const),
            pl.BlockSpec((H, 4 * H), const),
            pl.BlockSpec((1, 4 * H), const),
            pl.BlockSpec((4 * H, H), const),
            pl.BlockSpec((1, H), const),
        ],
        out_specs=pl.BlockSpec((1, S, H), lambda b: (b, 0, 0)),
        compiler_params=pltpu.CompilerParams(dimension_semantics=("parallel",)),
    )(x,
      layer["ln2_g"].reshape(1, H), layer["ln2_b"].reshape(1, H),
      layer["fc_w"], layer["fc_b"].reshape(1, 4 * H),
      layer["proj_w"], layer["proj_b"].reshape(1, H))


# --------------------------------------------------------------------------
# Final layer norm (per batch element)
# --------------------------------------------------------------------------
def _lnf_kernel(x_ref, g_ref, b_ref, o_ref):
    o_ref[0] = _layernorm(x_ref[0], g_ref[...], b_ref[...])


def final_layernorm(x, g, b):
    B, S, H = x.shape
    const = lambda i: (0, 0)
    return pl.pallas_call(
        _lnf_kernel,
        out_shape=jax.ShapeDtypeStruct((B, S, H), jnp.float32),
        grid=(B,),
        in_specs=[
            pl.BlockSpec((1, S, H), lambda i: (i, 0, 0)),
            pl.BlockSpec((1, H), const),
            pl.BlockSpec((1, H), const),
        ],
        out_specs=pl.BlockSpec((1, S, H), lambda i: (i, 0, 0)),
        compiler_params=pltpu.CompilerParams(dimension_semantics=("parallel",)),
    )(x, g.reshape(1, H), b.reshape(1, H))


# --------------------------------------------------------------------------
# Classifier head: (B, S*H) @ (S*H, C) + b
# K reduction tiled with f32 accumulator; C padded to a lane-dense 128.
# --------------------------------------------------------------------------
def _classifier_kernel(x_ref, w_ref, b_ref, o_ref, acc_ref):
    k = pl.program_id(0)

    @pl.when(k == 0)
    def _():
        acc_ref[...] = jnp.zeros_like(acc_ref)

    acc_ref[...] += jnp.dot(_bf16(x_ref[...]), _bf16(w_ref[...]),
                            preferred_element_type=jnp.float32)

    @pl.when(k == pl.num_programs(0) - 1)
    def _():
        o_ref[...] = acc_ref[...] + b_ref[...]


def classifier_head(x_flat, w, b):
    Bm, K = x_flat.shape
    C = w.shape[1]
    c_pad = ((C + 127) // 128) * 128               # lane-dense output
    w_p = jnp.pad(w, ((0, 0), (0, c_pad - C)))
    b_p = jnp.pad(b, (0, c_pad - C)).reshape(1, c_pad)
    tk = 512 if K % 512 == 0 else K                # K-tile (K = S*H can be huge)
    nk = K // tk
    out = pl.pallas_call(
        _classifier_kernel,
        out_shape=jax.ShapeDtypeStruct((Bm, c_pad), jnp.float32),
        grid=(nk,),
        in_specs=[
            pl.BlockSpec((Bm, tk), lambda k: (0, k)),
            pl.BlockSpec((tk, c_pad), lambda k: (k, 0)),
            pl.BlockSpec((1, c_pad), lambda k: (0, 0)),
        ],
        out_specs=pl.BlockSpec((Bm, c_pad), lambda k: (0, 0)),
        scratch_shapes=[pltpu.VMEM((Bm, c_pad), jnp.float32)],
        compiler_params=pltpu.CompilerParams(dimension_semantics=("arbitrary",)),
    )(x_flat, w_p, b_p)
    return out[:, :C]


# --------------------------------------------------------------------------
# Model: GPT-2 backbone + fc1 classifier head
# --------------------------------------------------------------------------
def init_params(key, *, vocab, max_seq, hidden, n_head, n_layer, num_classes):
    del n_head  # static config, not part of the traced pytree
    keys = jax.random.split(key, 3 + n_layer)
    std = 0.02
    p = {
        "wte": std * jax.random.normal(keys[0], (vocab, hidden), jnp.float32),
        "wpe": std * jax.random.normal(keys[1], (max_seq, hidden), jnp.float32),
        "lnf_g": jnp.ones((hidden,), jnp.float32),
        "lnf_b": jnp.zeros((hidden,), jnp.float32),
        "fc1_w": std * jax.random.normal(
            keys[2], (hidden * max_seq, num_classes), jnp.float32),
        "fc1_b": jnp.zeros((num_classes,), jnp.float32),
        "layers": [],
    }
    for l in range(n_layer):
        k0, k1, k2, k3 = jax.random.split(keys[3 + l], 4)
        p["layers"].append(
            {
                "ln1_g": jnp.ones((hidden,), jnp.float32),
                "ln1_b": jnp.zeros((hidden,), jnp.float32),
                "attn_w": std * jax.random.normal(k0, (hidden, 3 * hidden), jnp.float32),
                "attn_b": jnp.zeros((3 * hidden,), jnp.float32),
                "attn_proj_w": std * jax.random.normal(k1, (hidden, hidden), jnp.float32),
                "attn_proj_b": jnp.zeros((hidden,), jnp.float32),
                "ln2_g": jnp.ones((hidden,), jnp.float32),
                "ln2_b": jnp.zeros((hidden,), jnp.float32),
                "fc_w": std * jax.random.normal(k2, (hidden, 4 * hidden), jnp.float32),
                "fc_b": jnp.zeros((4 * hidden,), jnp.float32),
                "proj_w": std * jax.random.normal(k3, (4 * hidden, hidden), jnp.float32),
                "proj_b": jnp.zeros((hidden,), jnp.float32),
            }
        )
    return p


def gpt2_classifier_forward(params, input_ids, *, n_head):
    B, S = input_ids.shape
    H = params["wte"].shape[1]

    # embeddings (glue: gather in plain JAX)
    x = (params["wte"][input_ids]
         + params["wpe"][:S][None, :, :]).astype(jnp.float32)       # (B, S, H)

    for layer in params["layers"]:
        x = attn_block(x, layer, n_head=n_head)   # fused LN1+QKV+MHA+proj+res
        x = mlp_block(x, layer)                   # fused LN2+fc+gelu+proj+res

    x = final_layernorm(x, params["lnf_g"], params["lnf_b"])        # (B, S, H)

    # gpt_out.view(batch_size, -1) -> (B, S*H), then fc1
    logits = classifier_head(x.reshape(B, S * H),
                             params["fc1_w"], params["fc1_b"])      # (B, C)
    return logits
    # TODO(synk): for real GPT-2 sizes (H>=768, S>=512) re-derive weight/tile
    # sizes against the per-generation VMEM budget (v7x: 64 MiB physical /
    # 32 MiB default scoped) and split the MLP weights over a K-tiled grid.


# --------------------------------------------------------------------------
if __name__ == "__main__":
    # small GPT-2-style config
    B, S, H, NH, NL = 2, 8, 32, 4, 2
    VOCAB, NUM_CLASSES = 50, 3

    key = jax.random.PRNGKey(0)
    k_param, k_ids = jax.random.split(key)
    params = init_params(
        k_param, vocab=VOCAB, max_seq=S, hidden=H,
        n_head=NH, n_layer=NL, num_classes=NUM_CLASSES)
    input_ids = jax.random.randint(k_ids, (B, S), 0, VOCAB, dtype=jnp.int32)

    fwd = jax.jit(functools.partial(gpt2_classifier_forward, n_head=NH))
    logits = fwd(params, input_ids)
    jax.block_until_ready(logits)
    assert logits.shape == (B, NUM_CLASSES) and logits.dtype == jnp.float32
    print("KERNEL_OK")
</pallas_src>

<mosaic_0001>
module attributes {stable_mosaic.version = 11 : i64} {
  func.func @_attn_block_kernel(%arg0: i32, %arg1: memref<1x8x32xf32, #tpu.memory_space<vmem>>, %arg2: memref<1x32xf32, #tpu.memory_space<vmem>>, %arg3: memref<1x32xf32, #tpu.memory_space<vmem>>, %arg4: memref<32x96xf32, #tpu.memory_space<vmem>>, %arg5: memref<1x96xf32, #tpu.memory_space<vmem>>, %arg6: memref<32x32xf32, #tpu.memory_space<vmem>>, %arg7: memref<1x32xf32, #tpu.memory_space<vmem>>, %arg8: memref<1x8x32xf32, #tpu.memory_space<vmem>>, %arg9: memref<8x32xf32, #tpu.memory_space<vmem>>) attributes {dimension_semantics = [#tpu.dimension_semantics<parallel>], iteration_bounds = array<i64: 2>, scalar_prefetch = 0 : i64, scratch_operands = 1 : i64, tpu.core_type = #tpu.core_type<tc>, window_params = [{transform_indices = @transform_0, window_bounds = array<i64: 1, 8, 32>}, {pipeline_mode = #tpu.pipeline_mode<synchronous>, transform_indices = @transform_1, window_bounds = array<i64: 1, 32>}, {pipeline_mode = #tpu.pipeline_mode<synchronous>, transform_indices = @transform_2, window_bounds = array<i64: 1, 32>}, {pipeline_mode = #tpu.pipeline_mode<synchronous>, transform_indices = @transform_3, window_bounds = array<i64: 32, 96>}, {pipeline_mode = #tpu.pipeline_mode<synchronous>, transform_indices = @transform_4, window_bounds = array<i64: 1, 96>}, {pipeline_mode = #tpu.pipeline_mode<synchronous>, transform_indices = @transform_5, window_bounds = array<i64: 32, 32>}, {pipeline_mode = #tpu.pipeline_mode<synchronous>, transform_indices = @transform_6, window_bounds = array<i64: 1, 32>}, {transform_indices = @transform_7, window_bounds = array<i64: 1, 8, 32>}]} {
    %c0 = arith.constant 0 : index
    %c0_0 = arith.constant 0 : index
    %c0_1 = arith.constant 0 : index
    %0 = vector.load %arg1[%c0, %c0_0, %c0_1] : memref<1x8x32xf32, #tpu.memory_space<vmem>>, vector<1x8x32xf32>
    %1 = vector.shape_cast %0 : vector<1x8x32xf32> to vector<8x32xf32>
    %c0_2 = arith.constant 0 : index
    %c0_3 = arith.constant 0 : index
    %2 = vector.load %arg2[%c0_2, %c0_3] : memref<1x32xf32, #tpu.memory_space<vmem>>, vector<1x32xf32>
    %c0_4 = arith.constant 0 : index
    %c0_5 = arith.constant 0 : index
    %3 = vector.load %arg3[%c0_4, %c0_5] : memref<1x32xf32, #tpu.memory_space<vmem>>, vector<1x32xf32>
    %cst = arith.constant dense<0.000000e+00> : vector<8xf32>
    %4 = vector.multi_reduction <add>, %1, %cst [1] : vector<8x32xf32> to vector<8xf32>
    %5 = vector.shape_cast %4 : vector<8xf32> to vector<8x1xf32>
    %cst_6 = arith.constant 3.200000e+01 : f32
    %6 = vector.broadcast %cst_6 : f32 to vector<8x1xf32>
    %7 = arith.divf %5, %6 : vector<8x1xf32>
    %8 = vector.broadcast %7 : vector<8x1xf32> to vector<8x32xf32>
    %9 = arith.subf %1, %8 : vector<8x32xf32>
    %10 = arith.mulf %9, %9 : vector<8x32xf32>
    %cst_7 = arith.constant dense<0.000000e+00> : vector<8xf32>
    %11 = vector.multi_reduction <add>, %10, %cst_7 [1] : vector<8x32xf32> to vector<8xf32>
    %12 = vector.shape_cast %11 : vector<8xf32> to vector<8x1xf32>
    %cst_8 = arith.constant 3.200000e+01 : f32
    %13 = vector.broadcast %cst_8 : f32 to vector<8x1xf32>
    %14 = arith.divf %12, %13 : vector<8x1xf32>
    %15 = vector.broadcast %7 : vector<8x1xf32> to vector<8x32xf32>
    %16 = arith.subf %1, %15 : vector<8x32xf32>
    %cst_9 = arith.constant 9.99999974E-6 : f32
    %17 = vector.broadcast %cst_9 : f32 to vector<8x1xf32>
    %18 = arith.addf %14, %17 : vector<8x1xf32>
    %19 = math.rsqrt %18 : vector<8x1xf32>
    %20 = vector.broadcast %19 : vector<8x1xf32> to vector<8x32xf32>
    %21 = arith.mulf %16, %20 : vector<8x32xf32>
    %22 = vector.broadcast %2 : vector<1x32xf32> to vector<8x32xf32>
    %23 = arith.mulf %21, %22 : vector<8x32xf32>
    %24 = vector.broadcast %3 : vector<1x32xf32> to vector<8x32xf32>
    %25 = arith.addf %23, %24 : vector<8x32xf32>
    %26 = arith.truncf %25 : vector<8x32xf32> to vector<8x32xbf16>
    %c0_10 = arith.constant 0 : index
    %c0_11 = arith.constant 0 : index
    %27 = vector.load %arg4[%c0_10, %c0_11] : memref<32x96xf32, #tpu.memory_space<vmem>>, vector<32x96xf32>
    %28 = arith.truncf %27 : vector<32x96xf32> to vector<32x96xbf16>
    %cst_12 = arith.constant dense<0.000000e+00> : vector<8x96xf32>
    %29 = tpu.matmul %26, %28, %cst_12 {dimension_numbers = #tpu.dot_dimension_numbers<[1], [0], [0], [1], [0, 0, 1, 1], [], []>} : vector<8x32xbf16>, vector<32x96xbf16>, vector<8x96xf32> -> vector<8x96xf32>
    %c0_13 = arith.constant 0 : index
    %c0_14 = arith.constant 0 : index
    %30 = vector.load %arg5[%c0_13, %c0_14] : memref<1x96xf32, #tpu.memory_space<vmem>>, vector<1x96xf32>
    %31 = vector.broadcast %30 : vector<1x96xf32> to vector<8x96xf32>
    %32 = arith.addf %29, %31 : vector<8x96xf32>
    %33 = tpu.iota {dimensions = array<i32: 0>} : vector<8x8xi32>
    %34 = tpu.iota {dimensions = array<i32: 1>} : vector<8x8xi32>
    %35 = arith.cmpi sle, %34, %33 : vector<8x8xi32>
    %36 = vector.extract_strided_slice %32 {offsets = [0, 0], sizes = [8, 8], strides = [1, 1]} : vector<8x96xf32> to vector<8x8xf32>
    %cst_15 = arith.constant 0.353553385 : f32
    %37 = vector.broadcast %cst_15 : f32 to vector<8x8xf32>
    %38 = arith.mulf %36, %37 : vector<8x8xf32>
    %39 = vector.extract_strided_slice %32 {offsets = [0, 32], sizes = [8, 8], strides = [1, 1]} : vector<8x96xf32> to vector<8x8xf32>
    %40 = vector.extract_strided_slice %32 {offsets = [0, 64], sizes = [8, 8], strides = [1, 1]} : vector<8x96xf32> to vector<8x8xf32>
    %41 = arith.truncf %38 : vector<8x8xf32> to vector<8x8xbf16>
    %42 = arith.truncf %39 : vector<8x8xf32> to vector<8x8xbf16>
    %cst_16 = arith.constant dense<0.000000e+00> : vector<8x8xf32>
    %43 = tpu.matmul %41, %42, %cst_16 {dimension_numbers = #tpu.dot_dimension_numbers<[1], [1], [0], [0], [0, 0, 1, 0], [], []>} : vector<8x8xbf16>, vector<8x8xbf16>, vector<8x8xf32> -> vector<8x8xf32>
    %cst_17 = arith.constant -1.000000e+30 : f32
    %44 = vector.broadcast %cst_17 : f32 to vector<8x8xf32>
    %45 = arith.select %35, %43, %44 : vector<8x8xi1>, vector<8x8xf32>
    %cst_18 = arith.constant dense<0xFF800000> : vector<8xf32>
    %46 = vector.multi_reduction <maximumf>, %45, %cst_18 [1] : vector<8x8xf32> to vector<8xf32>
    %47 = vector.shape_cast %46 : vector<8xf32> to vector<8x1xf32>
    %48 = vector.broadcast %47 : vector<8x1xf32> to vector<8x8xf32>
    %49 = arith.subf %45, %48 : vector<8x8xf32>
    %50 = math.exp %49 : vector<8x8xf32>
    %cst_19 = arith.constant dense<0.000000e+00> : vector<8xf32>
    %51 = vector.multi_reduction <add>, %50, %cst_19 [1] : vector<8x8xf32> to vector<8xf32>
    %52 = vector.shape_cast %51 : vector<8xf32> to vector<8x1xf32>
    %53 = vector.broadcast %52 : vector<8x1xf32> to vector<8x8xf32>
    %54 = arith.divf %50, %53 : vector<8x8xf32>
    %55 = arith.truncf %54 : vector<8x8xf32> to vector<8x8xbf16>
    %56 = arith.truncf %40 : vector<8x8xf32> to vector<8x8xbf16>
    %cst_20 = arith.constant dense<0.000000e+00> : vector<8x8xf32>
    %57 = tpu.matmul %55, %56, %cst_20 {dimension_numbers = #tpu.dot_dimension_numbers<[1], [0], [0], [1], [0, 0, 1, 1], [], []>} : vector<8x8xbf16>, vector<8x8xbf16>, vector<8x8xf32> -> vector<8x8xf32>
    %c0_21 = arith.constant 0 : index
    %c0_22 = arith.constant 0 : index
    %58 = vector.load %arg9[%c0_21, %c0_22] : memref<8x32xf32, #tpu.memory_space<vmem>>, vector<8x8xf32>
    tpu.vector_store %arg9[%c0_21, %c0_22], %57 {strides = array<i32>} : memref<8x32xf32, #tpu.memory_space<vmem>>, vector<8x8xf32>,
    %59 = vector.extract_strided_slice %32 {offsets = [0, 8], sizes = [8, 8], strides = [1, 1]} : vector<8x96xf32> to vector<8x8xf32>
    %cst_23 = arith.constant 0.353553385 : f32
    %60 = vector.broadcast %cst_23 : f32 to vector<8x8xf32>
    %61 = arith.mulf %59, %60 : vector<8x8xf32>
    %62 = vector.extract_strided_slice %32 {offsets = [0, 40], sizes = [8, 8], strides = [1, 1]} : vector<8x96xf32> to vector<8x8xf32>
    %63 = vector.extract_strided_slice %32 {offsets = [0, 72], sizes = [8, 8], strides = [1, 1]} : vector<8x96xf32> to vector<8x8xf32>
    %64 = arith.truncf %61 : vector<8x8xf32> to vector<8x8xbf16>
    %65 = arith.truncf %62 : vector<8x8xf32> to vector<8x8xbf16>
    %cst_24 = arith.constant dense<0.000000e+00> : vector<8x8xf32>
    %66 = tpu.matmul %64, %65, %cst_24 {dimension_numbers = #tpu.dot_dimension_numbers<[1], [1], [0], [0], [0, 0, 1, 0], [], []>} : vector<8x8xbf16>, vector<8x8xbf16>, vector<8x8xf32> -> vector<8x8xf32>
    %cst_25 = arith.constant -1.000000e+30 : f32
    %67 = vector.broadcast %cst_25 : f32 to vector<8x8xf32>
    %68 = arith.select %35, %66, %67 : vector<8x8xi1>, vector<8x8xf32>
    %cst_26 = arith.constant dense<0xFF800000> : vector<8xf32>
    %69 = vector.multi_reduction <maximumf>, %68, %cst_26 [1] : vector<8x8xf32> to vector<8xf32>
    %70 = vector.shape_cast %69 : vector<8xf32> to vector<8x1xf32>
    %71 = vector.broadcast %70 : vector<8x1xf32> to vector<8x8xf32>
    %72 = arith.subf %68, %71 : vector<8x8xf32>
    %73 = math.exp %72 : vector<8x8xf32>
    %cst_27 = arith.constant dense<0.000000e+00> : vector<8xf32>
    %74 = vector.multi_reduction <add>, %73, %cst_27 [1] : vector<8x8xf32> to vector<8xf32>
    %75 = vector.shape_cast %74 : vector<8xf32> to vector<8x1xf32>
    %76 = vector.broadcast %75 : vector<8x1xf32> to vector<8x8xf32>
    %77 = arith.divf %73, %76 : vector<8x8xf32>
    %78 = arith.truncf %77 : vector<8x8xf32> to vector<8x8xbf16>
    %79 = arith.truncf %63 : vector<8x8xf32> to vector<8x8xbf16>
    %cst_28 = arith.constant dense<0.000000e+00> : vector<8x8xf32>
    %80 = tpu.matmul %78, %79, %cst_28 {dimension_numbers = #tpu.dot_dimension_numbers<[1], [0], [0], [1], [0, 0, 1, 1], [], []>} : vector<8x8xbf16>, vector<8x8xbf16>, vector<8x8xf32> -> vector<8x8xf32>
    %c0_29 = arith.constant 0 : index
    %c8 = arith.constant 8 : index
    %81 = vector.load %arg9[%c0_29, %c8] : memref<8x32xf32, #tpu.memory_space<vmem>>, vector<8x8xf32>
    tpu.vector_store %arg9[%c0_29, %c8], %80 {strides = array<i32>} : memref<8x32xf32, #tpu.memory_space<vmem>>, vector<8x8xf32>,
    %82 = vector.extract_strided_slice %32 {offsets = [0, 16], sizes = [8, 8], strides = [1, 1]} : vector<8x96xf32> to vector<8x8xf32>
    %cst_30 = arith.constant 0.353553385 : f32
    %83 = vector.broadcast %cst_30 : f32 to vector<8x8xf32>
    %84 = arith.mulf %82, %83 : vector<8x8xf32>
    %85 = vector.extract_strided_slice %32 {offsets = [0, 48], sizes = [8, 8], strides = [1, 1]} : vector<8x96xf32> to vector<8x8xf32>
    %86 = vector.extract_strided_slice %32 {offsets = [0, 80], sizes = [8, 8], strides = [1, 1]} : vector<8x96xf32> to vector<8x8xf32>
    %87 = arith.truncf %84 : vector<8x8xf32> to vector<8x8xbf16>
    %88 = arith.truncf %85 : vector<8x8xf32> to vector<8x8xbf16>
    %cst_31 = arith.constant dense<0.000000e+00> : vector<8x8xf32>
    %89 = tpu.matmul %87, %88, %cst_31 {dimension_numbers = #tpu.dot_dimension_numbers<[1], [1], [0], [0], [0, 0, 1, 0], [], []>} : vector<8x8xbf16>, vector<8x8xbf16>, vector<8x8xf32> -> vector<8x8xf32>
    %cst_32 = arith.constant -1.000000e+30 : f32
    %90 = vector.broadcast %cst_32 : f32 to vector<8x8xf32>
    %91 = arith.select %35, %89, %90 : vector<8x8xi1>, vector<8x8xf32>
    %cst_33 = arith.constant dense<0xFF800000> : vector<8xf32>
    %92 = vector.multi_reduction <maximumf>, %91, %cst_33 [1] : vector<8x8xf32> to vector<8xf32>
    %93 = vector.shape_cast %92 : vector<8xf32> to vector<8x1xf32>
    %94 = vector.broadcast %93 : vector<8x1xf32> to vector<8x8xf32>
    %95 = arith.subf %91, %94 : vector<8x8xf32>
    %96 = math.exp %95 : vector<8x8xf32>
    %cst_34 = arith.constant dense<0.000000e+00> : vector<8xf32>
    %97 = vector.multi_reduction <add>, %96, %cst_34 [1] : vector<8x8xf32> to vector<8xf32>
    %98 = vector.shape_cast %97 : vector<8xf32> to vector<8x1xf32>
    %99 = vector.broadcast %98 : vector<8x1xf32> to vector<8x8xf32>
    %100 = arith.divf %96, %99 : vector<8x8xf32>
    %101 = arith.truncf %100 : vector<8x8xf32> to vector<8x8xbf16>
    %102 = arith.truncf %86 : vector<8x8xf32> to vector<8x8xbf16>
    %cst_35 = arith.constant dense<0.000000e+00> : vector<8x8xf32>
    %103 = tpu.matmul %101, %102, %cst_35 {dimension_numbers = #tpu.dot_dimension_numbers<[1], [0], [0], [1], [0, 0, 1, 1], [], []>} : vector<8x8xbf16>, vector<8x8xbf16>, vector<8x8xf32> -> vector<8x8xf32>
    %c0_36 = arith.constant 0 : index
    %c16 = arith.constant 16 : index
    %104 = vector.load %arg9[%c0_36, %c16] : memref<8x32xf32, #tpu.memory_space<vmem>>, vector<8x8xf32>
    tpu.vector_store %arg9[%c0_36, %c16], %103 {strides = array<i32>} : memref<8x32xf32, #tpu.memory_space<vmem>>, vector<8x8xf32>,
    %105 = vector.extract_strided_slice %32 {offsets = [0, 24], sizes = [8, 8], strides = [1, 1]} : vector<8x96xf32> to vector<8x8xf32>
    %cst_37 = arith.constant 0.353553385 : f32
    %106 = vector.broadcast %cst_37 : f32 to vector<8x8xf32>
    %107 = arith.mulf %105, %106 : vector<8x8xf32>
    %108 = vector.extract_strided_slice %32 {offsets = [0, 56], sizes = [8, 8], strides = [1, 1]} : vector<8x96xf32> to vector<8x8xf32>
    %109 = vector.extract_strided_slice %32 {offsets = [0, 88], sizes = [8, 8], strides = [1, 1]} : vector<8x96xf32> to vector<8x8xf32>
    %110 = arith.truncf %107 : vector<8x8xf32> to vector<8x8xbf16>
    %111 = arith.truncf %108 : vector<8x8xf32> to vector<8x8xbf16>
    %cst_38 = arith.constant dense<0.000000e+00> : vector<8x8xf32>
    %112 = tpu.matmul %110, %111, %cst_38 {dimension_numbers = #tpu.dot_dimension_numbers<[1], [1], [0], [0], [0, 0, 1, 0], [], []>} : vector<8x8xbf16>, vector<8x8xbf16>, vector<8x8xf32> -> vector<8x8xf32>
    %cst_39 = arith.constant -1.000000e+30 : f32
    %113 = vector.broadcast %cst_39 : f32 to vector<8x8xf32>
    %114 = arith.select %35, %112, %113 : vector<8x8xi1>, vector<8x8xf32>
    %cst_40 = arith.constant dense<0xFF800000> : vector<8xf32>
    %115 = vector.multi_reduction <maximumf>, %114, %cst_40 [1] : vector<8x8xf32> to vector<8xf32>
    %116 = vector.shape_cast %115 : vector<8xf32> to vector<8x1xf32>
    %117 = vector.broadcast %116 : vector<8x1xf32> to vector<8x8xf32>
    %118 = arith.subf %114, %117 : vector<8x8xf32>
    %119 = math.exp %118 : vector<8x8xf32>
    %cst_41 = arith.constant dense<0.000000e+00> : vector<8xf32>
    %120 = vector.multi_reduction <add>, %119, %cst_41 [1] : vector<8x8xf32> to vector<8xf32>
    %121 = vector.shape_cast %120 : vector<8xf32> to vector<8x1xf32>
    %122 = vector.broadcast %121 : vector<8x1xf32> to vector<8x8xf32>
    %123 = arith.divf %119, %122 : vector<8x8xf32>
    %124 = arith.truncf %123 : vector<8x8xf32> to vector<8x8xbf16>
    %125 = arith.truncf %109 : vector<8x8xf32> to vector<8x8xbf16>
    %cst_42 = arith.constant dense<0.000000e+00> : vector<8x8xf32>
    %126 = tpu.matmul %124, %125, %cst_42 {dimension_numbers = #tpu.dot_dimension_numbers<[1], [0], [0], [1], [0, 0, 1, 1], [], []>} : vector<8x8xbf16>, vector<8x8xbf16>, vector<8x8xf32> -> vector<8x8xf32>
    %c0_43 = arith.constant 0 : index
    %c24 = arith.constant 24 : index
    %127 = vector.load %arg9[%c0_43, %c24] : memref<8x32xf32, #tpu.memory_space<vmem>>, vector<8x8xf32>
    tpu.vector_store %arg9[%c0_43, %c24], %126 {strides = array<i32>} : memref<8x32xf32, #tpu.memory_space<vmem>>, vector<8x8xf32>,
    %c0_44 = arith.constant 0 : index
    %c0_45 = arith.constant 0 : index
    %128 = vector.load %arg9[%c0_44, %c0_45] : memref<8x32xf32, #tpu.memory_space<vmem>>, vector<8x32xf32>
    %129 = arith.truncf %128 : vector<8x32xf32> to vector<8x32xbf16>
    %c0_46 = arith.constant 0 : index
    %c0_47 = arith.constant 0 : index
    %130 = vector.load %arg6[%c0_46, %c0_47] : memref<32x32xf32, #tpu.memory_space<vmem>>, vector<32x32xf32>
    %131 = arith.truncf %130 : vector<32x32xf32> to vector<32x32xbf16>
    %cst_48 = arith.constant dense<0.000000e+00> : vector<8x32xf32>
    %132 = tpu.matmul %129, %131, %cst_48 {dimension_numbers = #tpu.dot_dimension_numbers<[1], [0], [0], [1], [0, 0, 1, 1], [], []>} : vector<8x32xbf16>, vector<32x32xbf16>, vector<8x32xf32> -> vector<8x32xf32>
    %c0_49 = arith.constant 0 : index
    %c0_50 = arith.constant 0 : index
    %133 = vector.load %arg7[%c0_49, %c0_50] : memref<1x32xf32, #tpu.memory_space<vmem>>, vector<1x32xf32>
    %134 = vector.broadcast %133 : vector<1x32xf32> to vector<8x32xf32>
    %135 = arith.addf %132, %134 : vector<8x32xf32>
    %136 = arith.addf %1, %135 : vector<8x32xf32>
    %c0_51 = arith.constant 0 : index
    %c0_52 = arith.constant 0 : index
    %c0_53 = arith.constant 0 : index
    %137 = vector.load %arg8[%c0_51, %c0_52, %c0_53] : memref<1x8x32xf32, #tpu.memory_space<vmem>>, vector<1x8x32xf32>
    %138 = vector.shape_cast %137 : vector<1x8x32xf32> to vector<8x32xf32>
    %139 = vector.shape_cast %136 : vector<8x32xf32> to vector<1x8x32xf32>
    tpu.vector_store %arg8[%c0_51, %c0_52, %c0_53], %139 {strides = array<i32>} : memref<1x8x32xf32, #tpu.memory_space<vmem>>, vector<1x8x32xf32>,
    return
  }
  func.func @transform_0(%arg0: i32) -> (i32, i32, i32) {
    %c0_i32 = arith.constant 0 : i32
    %c0_i32_0 = arith.constant 0 : i32
    %c0_i32_1 = arith.constant 0 : i32
    return %arg0, %c0_i32, %c0_i32_0 : i32, i32, i32
  }
  func.func @transform_1(%arg0: i32) -> (i32, i32) {
    %c0_i32 = arith.constant 0 : i32
    %c0_i32_0 = arith.constant 0 : i32
    %c0_i32_1 = arith.constant 0 : i32
    return %c0_i32, %c0_i32_0 : i32, i32
  }
  func.func @transform_2(%arg0: i32) -> (i32, i32) {
    %c0_i32 = arith.constant 0 : i32
    %c0_i32_0 = arith.constant 0 : i32
    %c0_i32_1 = arith.constant 0 : i32
    return %c0_i32, %c0_i32_0 : i32, i32
  }
  func.func @transform_3(%arg0: i32) -> (i32, i32) {
    %c0_i32 = arith.constant 0 : i32
    %c0_i32_0 = arith.constant 0 : i32
    %c0_i32_1 = arith.constant 0 : i32
    return %c0_i32, %c0_i32_0 : i32, i32
  }
  func.func @transform_4(%arg0: i32) -> (i32, i32) {
    %c0_i32 = arith.constant 0 : i32
    %c0_i32_0 = arith.constant 0 : i32
    %c0_i32_1 = arith.constant 0 : i32
    return %c0_i32, %c0_i32_0 : i32, i32
  }
  func.func @transform_5(%arg0: i32) -> (i32, i32) {
    %c0_i32 = arith.constant 0 : i32
    %c0_i32_0 = arith.constant 0 : i32
    %c0_i32_1 = arith.constant 0 : i32
    return %c0_i32, %c0_i32_0 : i32, i32
  }
  func.func @transform_6(%arg0: i32) -> (i32, i32) {
    %c0_i32 = arith.constant 0 : i32
    %c0_i32_0 = arith.constant 0 : i32
    %c0_i32_1 = arith.constant 0 : i32
    return %c0_i32, %c0_i32_0 : i32, i32
  }
  func.func @transform_7(%arg0: i32) -> (i32, i32, i32) {
    %c0_i32 = arith.constant 0 : i32
    %c0_i32_0 = arith.constant 0 : i32
    %c0_i32_1 = arith.constant 0 : i32
    return %arg0, %c0_i32, %c0_i32_0 : i32, i32, i32
  }
}

module attributes {stable_mosaic.version = 11 : i64} {
  func.func @_mlp_block_kernel(%arg0: i32, %arg1: memref<1x8x32xf32, #tpu.memory_space<vmem>>, %arg2: memref<1x32xf32, #tpu.memory_space<vmem>>, %arg3: memref<1x32xf32, #tpu.memory_space<vmem>>, %arg4: memref<32x128xf32, #tpu.memory_space<vmem>>, %arg5: memref<1x128xf32, #tpu.memory_space<vmem>>, %arg6: memref<128x32xf32, #tpu.memory_space<vmem>>, %arg7: memref<1x32xf32, #tpu.memory_space<vmem>>, %arg8: memref<1x8x32xf32, #tpu.memory_space<vmem>>) attributes {dimension_semantics = [#tpu.dimension_semantics<parallel>], iteration_bounds = array<i64: 2>, scalar_prefetch = 0 : i64, scratch_operands = 0 : i64, tpu.core_type = #tpu.core_type<tc>, window_params = [{transform_indices = @transform_0, window_bounds = array<i64: 1, 8, 32>}, {pipeline_mode = #tpu.pipeline_mode<synchronous>, transform_indices = @transform_1, window_bounds = array<i64: 1, 32>}, {pipeline_mode = #tpu.pipeline_mode<synchronous>, transform_indices = @transform_2, window_bounds = array<i64: 1, 32>}, {pipeline_mode = #tpu.pipeline_mode<synchronous>, transform_indices = @transform_3, window_bounds = array<i64: 32, 128>}, {pipeline_mode = #tpu.pipeline_mode<synchronous>, transform_indices = @transform_4, window_bounds = array<i64: 1, 128>}, {pipeline_mode = #tpu.pipeline_mode<synchronous>, transform_indices = @transform_5, window_bounds = array<i64: 128, 32>}, {pipeline_mode = #tpu.pipeline_mode<synchronous>, transform_indices = @transform_6, window_bounds = array<i64: 1, 32>}, {transform_indices = @transform_7, window_bounds = array<i64: 1, 8, 32>}]} {
    %c0 = arith.constant 0 : index
    %c0_0 = arith.constant 0 : index
    %c0_1 = arith.constant 0 : index
    %0 = vector.load %arg1[%c0, %c0_0, %c0_1] : memref<1x8x32xf32, #tpu.memory_space<vmem>>, vector<1x8x32xf32>
    %1 = vector.shape_cast %0 : vector<1x8x32xf32> to vector<8x32xf32>
    %c0_2 = arith.constant 0 : index
    %c0_3 = arith.constant 0 : index
    %2 = vector.load %arg2[%c0_2, %c0_3] : memref<1x32xf32, #tpu.memory_space<vmem>>, vector<1x32xf32>
    %c0_4 = arith.constant 0 : index
    %c0_5 = arith.constant 0 : index
    %3 = vector.load %arg3[%c0_4, %c0_5] : memref<1x32xf32, #tpu.memory_space<vmem>>, vector<1x32xf32>
    %cst = arith.constant dense<0.000000e+00> : vector<8xf32>
    %4 = vector.multi_reduction <add>, %1, %cst [1] : vector<8x32xf32> to vector<8xf32>
    %5 = vector.shape_cast %4 : vector<8xf32> to vector<8x1xf32>
    %cst_6 = arith.constant 3.200000e+01 : f32
    %6 = vector.broadcast %cst_6 : f32 to vector<8x1xf32>
    %7 = arith.divf %5, %6 : vector<8x1xf32>
    %8 = vector.broadcast %7 : vector<8x1xf32> to vector<8x32xf32>
    %9 = arith.subf %1, %8 : vector<8x32xf32>
    %10 = arith.mulf %9, %9 : vector<8x32xf32>
    %cst_7 = arith.constant dense<0.000000e+00> : vector<8xf32>
    %11 = vector.multi_reduction <add>, %10, %cst_7 [1] : vector<8x32xf32> to vector<8xf32>
    %12 = vector.shape_cast %11 : vector<8xf32> to vector<8x1xf32>
    %cst_8 = arith.constant 3.200000e+01 : f32
    %13 = vector.broadcast %cst_8 : f32 to vector<8x1xf32>
    %14 = arith.divf %12, %13 : vector<8x1xf32>
    %15 = vector.broadcast %7 : vector<8x1xf32> to vector<8x32xf32>
    %16 = arith.subf %1, %15 : vector<8x32xf32>
    %cst_9 = arith.constant 9.99999974E-6 : f32
    %17 = vector.broadcast %cst_9 : f32 to vector<8x1xf32>
    %18 = arith.addf %14, %17 : vector<8x1xf32>
    %19 = math.rsqrt %18 : vector<8x1xf32>
    %20 = vector.broadcast %19 : vector<8x1xf32> to vector<8x32xf32>
    %21 = arith.mulf %16, %20 : vector<8x32xf32>
    %22 = vector.broadcast %2 : vector<1x32xf32> to vector<8x32xf32>
    %23 = arith.mulf %21, %22 : vector<8x32xf32>
    %24 = vector.broadcast %3 : vector<1x32xf32> to vector<8x32xf32>
    %25 = arith.addf %23, %24 : vector<8x32xf32>
    %26 = arith.truncf %25 : vector<8x32xf32> to vector<8x32xbf16>
    %c0_10 = arith.constant 0 : index
    %c0_11 = arith.constant 0 : index
    %27 = vector.load %arg4[%c0_10, %c0_11] : memref<32x128xf32, #tpu.memory_space<vmem>>, vector<32x128xf32>
    %28 = arith.truncf %27 : vector<32x128xf32> to vector<32x128xbf16>
    %cst_12 = arith.constant dense<0.000000e+00> : vector<8x128xf32>
    %29 = tpu.matmul %26, %28, %cst_12 {dimension_numbers = #tpu.dot_dimension_numbers<[1], [0], [0], [1], [0, 0, 1, 1], [], []>} : vector<8x32xbf16>, vector<32x128xbf16>, vector<8x128xf32> -> vector<8x128xf32>
    %c0_13 = arith.constant 0 : index
    %c0_14 = arith.constant 0 : index
    %30 = vector.load %arg5[%c0_13, %c0_14] : memref<1x128xf32, #tpu.memory_space<vmem>>, vector<1x128xf32>
    %31 = vector.broadcast %30 : vector<1x128xf32> to vector<8x128xf32>
    %32 = arith.addf %29, %31 : vector<8x128xf32>
    %cst_15 = arith.constant 5.000000e-01 : f32
    %33 = vector.broadcast %cst_15 : f32 to vector<8x128xf32>
    %34 = arith.mulf %33, %32 : vector<8x128xf32>
    %cst_16 = arith.constant 4.471500e-02 : f32
    %35 = vector.broadcast %cst_16 : f32 to vector<8x128xf32>
    %36 = arith.mulf %35, %32 : vector<8x128xf32>
    %37 = arith.mulf %36, %32 : vector<8x128xf32>
    %38 = arith.mulf %37, %32 : vector<8x128xf32>
    %39 = arith.addf %32, %38 : vector<8x128xf32>
    %cst_17 = arith.constant 0.797884583 : f32
    %40 = vector.broadcast %cst_17 : f32 to vector<8x128xf32>
    %41 = arith.mulf %40, %39 : vector<8x128xf32>
    %42 = math.tanh %41 : vector<8x128xf32>
    %cst_18 = arith.constant 1.000000e+00 : f32
    %43 = vector.broadcast %cst_18 : f32 to vector<8x128xf32>
    %44 = arith.addf %43, %42 : vector<8x128xf32>
    %45 = arith.mulf %34, %44 : vector<8x128xf32>
    %46 = arith.truncf %45 : vector<8x128xf32> to vector<8x128xbf16>
    %c0_19 = arith.constant 0 : index
    %c0_20 = arith.constant 0 : index
    %47 = vector.load %arg6[%c0_19, %c0_20] : memref<128x32xf32, #tpu.memory_space<vmem>>, vector<128x32xf32>
    %48 = arith.truncf %47 : vector<128x32xf32> to vector<128x32xbf16>
    %cst_21 = arith.constant dense<0.000000e+00> : vector<8x32xf32>
    %49 = tpu.matmul %46, %48, %cst_21 {dimension_numbers = #tpu.dot_dimension_numbers<[1], [0], [0], [1], [0, 0, 1, 1], [], []>} : vector<8x128xbf16>, vector<128x32xbf16>, vector<8x32xf32> -> vector<8x32xf32>
    %c0_22 = arith.constant 0 : index
    %c0_23 = arith.constant 0 : index
    %50 = vector.load %arg7[%c0_22, %c0_23] : memref<1x32xf32, #tpu.memory_space<vmem>>, vector<1x32xf32>
    %51 = vector.broadcast %50 : vector<1x32xf32> to vector<8x32xf32>
    %52 = arith.addf %49, %51 : vector<8x32xf32>
    %53 = arith.addf %1, %52 : vector<8x32xf32>
    %c0_24 = arith.constant 0 : index
    %c0_25 = arith.constant 0 : index
    %c0_26 = arith.constant 0 : index
    %54 = vector.load %arg8[%c0_24, %c0_25, %c0_26] : memref<1x8x32xf32, #tpu.memory_space<vmem>>, vector<1x8x32xf32>
    %55 = vector.shape_cast %54 : vector<1x8x32xf32> to vector<8x32xf32>
    %56 = vector.shape_cast %53 : vector<8x32xf32> to vector<1x8x32xf32>
    tpu.vector_store %arg8[%c0_24, %c0_25, %c0_26], %56 {strides = array<i32>} : memref<1x8x32xf32, #tpu.memory_space<vmem>>, vector<1x8x32xf32>,
    return
  }
  func.func @transform_0(%arg0: i32) -> (i32, i32, i32) {
    %c0_i32 = arith.constant 0 : i32
    %c0_i32_0 = arith.constant 0 : i32
    %c0_i32_1 = arith.constant 0 : i32
    return %arg0, %c0_i32, %c0_i32_0 : i32, i32, i32
  }
  func.func @transform_1(%arg0: i32) -> (i32, i32) {
    %c0_i32 = arith.constant 0 : i32
    %c0_i32_0 = arith.constant 0 : i32
    %c0_i32_1 = arith.constant 0 : i32
    return %c0_i32, %c0_i32_0 : i32, i32
  }
  func.func @transform_2(%arg0: i32) -> (i32, i32) {
    %c0_i32 = arith.constant 0 : i32
    %c0_i32_0 = arith.constant 0 : i32
    %c0_i32_1 = arith.constant 0 : i32
    return %c0_i32, %c0_i32_0 : i32, i32
  }
  func.func @transform_3(%arg0: i32) -> (i32, i32) {
    %c0_i32 = arith.constant 0 : i32
    %c0_i32_0 = arith.constant 0 : i32
    %c0_i32_1 = arith.constant 0 : i32
    return %c0_i32, %c0_i32_0 : i32, i32
  }
  func.func @transform_4(%arg0: i32) -> (i32, i32) {
    %c0_i32 = arith.constant 0 : i32
    %c0_i32_0 = arith.constant 0 : i32
    %c0_i32_1 = arith.constant 0 : i32
    return %c0_i32, %c0_i32_0 : i32, i32
  }
  func.func @transform_5(%arg0: i32) -> (i32, i32) {
    %c0_i32 = arith.constant 0 : i32
    %c0_i32_0 = arith.constant 0 : i32
    %c0_i32_1 = arith.constant 0 : i32
    return %c0_i32, %c0_i32_0 : i32, i32
  }
  func.func @transform_6(%arg0: i32) -> (i32, i32) {
    %c0_i32 = arith.constant 0 : i32
    %c0_i32_0 = arith.constant 0 : i32
    %c0_i32_1 = arith.constant 0 : i32
    return %c0_i32, %c0_i32_0 : i32, i32
  }
  func.func @transform_7(%arg0: i32) -> (i32, i32, i32) {
    %c0_i32 = arith.constant 0 : i32
    %c0_i32_0 = arith.constant 0 : i32
    %c0_i32_1 = arith.constant 0 : i32
    return %arg0, %c0_i32, %c0_i32_0 : i32, i32, i32
  }
}

module attributes {stable_mosaic.version = 11 : i64} {
  func.func @_lnf_kernel(%arg0: i32, %arg1: memref<1x8x32xf32, #tpu.memory_space<vmem>>, %arg2: memref<1x32xf32, #tpu.memory_space<vmem>>, %arg3: memref<1x32xf32, #tpu.memory_space<vmem>>, %arg4: memref<1x8x32xf32, #tpu.memory_space<vmem>>) attributes {dimension_semantics = [#tpu.dimension_semantics<parallel>], iteration_bounds = array<i64: 2>, scalar_prefetch = 0 : i64, scratch_operands = 0 : i64, tpu.core_type = #tpu.core_type<tc>, window_params = [{transform_indices = @transform_0, window_bounds = array<i64: 1, 8, 32>}, {pipeline_mode = #tpu.pipeline_mode<synchronous>, transform_indices = @transform_1, window_bounds = array<i64: 1, 32>}, {pipeline_mode = #tpu.pipeline_mode<synchronous>, transform_indices = @transform_2, window_bounds = array<i64: 1, 32>}, {transform_indices = @transform_3, window_bounds = array<i64: 1, 8, 32>}]} {
    %c0 = arith.constant 0 : index
    %c0_0 = arith.constant 0 : index
    %c0_1 = arith.constant 0 : index
    %0 = vector.load %arg1[%c0, %c0_0, %c0_1] : memref<1x8x32xf32, #tpu.memory_space<vmem>>, vector<1x8x32xf32>
    %1 = vector.shape_cast %0 : vector<1x8x32xf32> to vector<8x32xf32>
    %c0_2 = arith.constant 0 : index
    %c0_3 = arith.constant 0 : index
    %2 = vector.load %arg2[%c0_2, %c0_3] : memref<1x32xf32, #tpu.memory_space<vmem>>, vector<1x32xf32>
    %c0_4 = arith.constant 0 : index
    %c0_5 = arith.constant 0 : index
    %3 = vector.load %arg3[%c0_4, %c0_5] : memref<1x32xf32, #tpu.memory_space<vmem>>, vector<1x32xf32>
    %cst = arith.constant dense<0.000000e+00> : vector<8xf32>
    %4 = vector.multi_reduction <add>, %1, %cst [1] : vector<8x32xf32> to vector<8xf32>
    %5 = vector.shape_cast %4 : vector<8xf32> to vector<8x1xf32>
    %cst_6 = arith.constant 3.200000e+01 : f32
    %6 = vector.broadcast %cst_6 : f32 to vector<8x1xf32>
    %7 = arith.divf %5, %6 : vector<8x1xf32>
    %8 = vector.broadcast %7 : vector<8x1xf32> to vector<8x32xf32>
    %9 = arith.subf %1, %8 : vector<8x32xf32>
    %10 = arith.mulf %9, %9 : vector<8x32xf32>
    %cst_7 = arith.constant dense<0.000000e+00> : vector<8xf32>
    %11 = vector.multi_reduction <add>, %10, %cst_7 [1] : vector<8x32xf32> to vector<8xf32>
    %12 = vector.shape_cast %11 : vector<8xf32> to vector<8x1xf32>
    %cst_8 = arith.constant 3.200000e+01 : f32
    %13 = vector.broadcast %cst_8 : f32 to vector<8x1xf32>
    %14 = arith.divf %12, %13 : vector<8x1xf32>
    %15 = vector.broadcast %7 : vector<8x1xf32> to vector<8x32xf32>
    %16 = arith.subf %1, %15 : vector<8x32xf32>
    %cst_9 = arith.constant 9.99999974E-6 : f32
    %17 = vector.broadcast %cst_9 : f32 to vector<8x1xf32>
    %18 = arith.addf %14, %17 : vector<8x1xf32>
    %19 = math.rsqrt %18 : vector<8x1xf32>
    %20 = vector.broadcast %19 : vector<8x1xf32> to vector<8x32xf32>
    %21 = arith.mulf %16, %20 : vector<8x32xf32>
    %22 = vector.broadcast %2 : vector<1x32xf32> to vector<8x32xf32>
    %23 = arith.mulf %21, %22 : vector<8x32xf32>
    %24 = vector.broadcast %3 : vector<1x32xf32> to vector<8x32xf32>
    %25 = arith.addf %23, %24 : vector<8x32xf32>
    %c0_10 = arith.constant 0 : index
    %c0_11 = arith.constant 0 : index
    %c0_12 = arith.constant 0 : index
    %26 = vector.load %arg4[%c0_10, %c0_11, %c0_12] : memref<1x8x32xf32, #tpu.memory_space<vmem>>, vector<1x8x32xf32>
    %27 = vector.shape_cast %26 : vector<1x8x32xf32> to vector<8x32xf32>
    %28 = vector.shape_cast %25 : vector<8x32xf32> to vector<1x8x32xf32>
    tpu.vector_store %arg4[%c0_10, %c0_11, %c0_12], %28 {strides = array<i32>} : memref<1x8x32xf32, #tpu.memory_space<vmem>>, vector<1x8x32xf32>,
    return
  }
  func.func @transform_0(%arg0: i32) -> (i32, i32, i32) {
    %c0_i32 = arith.constant 0 : i32
    %c0_i32_0 = arith.constant 0 : i32
    %c0_i32_1 = arith.constant 0 : i32
    return %arg0, %c0_i32, %c0_i32_0 : i32, i32, i32
  }
  func.func @transform_1(%arg0: i32) -> (i32, i32) {
    %c0_i32 = arith.constant 0 : i32
    %c0_i32_0 = arith.constant 0 : i32
    %c0_i32_1 = arith.constant 0 : i32
    return %c0_i32, %c0_i32_0 : i32, i32
  }
  func.func @transform_2(%arg0: i32) -> (i32, i32) {
    %c0_i32 = arith.constant 0 : i32
    %c0_i32_0 = arith.constant 0 : i32
    %c0_i32_1 = arith.constant 0 : i32
    return %c0_i32, %c0_i32_0 : i32, i32
  }
  func.func @transform_3(%arg0: i32) -> (i32, i32, i32) {
    %c0_i32 = arith.constant 0 : i32
    %c0_i32_0 = arith.constant 0 : i32
    %c0_i32_1 = arith.constant 0 : i32
    return %arg0, %c0_i32, %c0_i32_0 : i32, i32, i32
  }
}

module attributes {stable_mosaic.version = 11 : i64} {
  func.func @_classifier_kernel(%arg0: i32, %arg1: memref<2x256xf32, #tpu.memory_space<vmem>>, %arg2: memref<256x128xf32, #tpu.memory_space<vmem>>, %arg3: memref<1x128xf32, #tpu.memory_space<vmem>>, %arg4: memref<2x128xf32, #tpu.memory_space<vmem>>, %arg5: memref<2x128xf32, #tpu.memory_space<vmem>>) attributes {dimension_semantics = [#tpu.dimension_semantics<arbitrary>], iteration_bounds = array<i64: 1>, scalar_prefetch = 0 : i64, scratch_operands = 1 : i64, tpu.core_type = #tpu.core_type<tc>, window_params = [{transform_indices = @transform_0, window_bounds = array<i64: 2, 256>}, {transform_indices = @transform_1, window_bounds = array<i64: 256, 128>}, {pipeline_mode = #tpu.pipeline_mode<synchronous>, transform_indices = @transform_2, window_bounds = array<i64: 1, 128>}, {pipeline_mode = #tpu.pipeline_mode<synchronous>, transform_indices = @transform_3, window_bounds = array<i64: 2, 128>}]} {
    %c0_i32 = arith.constant 0 : i32
    %0 = arith.cmpi eq, %arg0, %c0_i32 : i32
    %1 = arith.extui %0 : i1 to i32
    %c0_i32_0 = arith.constant 0 : i32
    %2 = arith.cmpi ne, %1, %c0_i32_0 : i32
    scf.if %2 {
      %cst_10 = arith.constant 0.000000e+00 : f32
      %14 = vector.broadcast %cst_10 : f32 to vector<2x128xf32>
      %c0_11 = arith.constant 0 : index
      %c0_12 = arith.constant 0 : index
      %15 = vector.load %arg5[%c0_11, %c0_12] : memref<2x128xf32, #tpu.memory_space<vmem>>, vector<2x128xf32>
      tpu.vector_store %arg5[%c0_11, %c0_12], %14 {strides = array<i32>} : memref<2x128xf32, #tpu.memory_space<vmem>>, vector<2x128xf32>,
    } else {
    }
    %c0 = arith.constant 0 : index
    %c0_1 = arith.constant 0 : index
    %3 = vector.load %arg5[%c0, %c0_1] : memref<2x128xf32, #tpu.memory_space<vmem>>, vector<2x128xf32>
    %c0_2 = arith.constant 0 : index
    %c0_3 = arith.constant 0 : index
    %4 = vector.load %arg1[%c0_2, %c0_3] : memref<2x256xf32, #tpu.memory_space<vmem>>, vector<2x256xf32>
    %5 = arith.truncf %4 : vector<2x256xf32> to vector<2x256xbf16>
    %c0_4 = arith.constant 0 : index
    %c0_5 = arith.constant 0 : index
    %6 = vector.load %arg2[%c0_4, %c0_5] : memref<256x128xf32, #tpu.memory_space<vmem>>, vector<256x128xf32>
    %7 = arith.truncf %6 : vector<256x128xf32> to vector<256x128xbf16>
    %cst = arith.constant dense<0.000000e+00> : vector<2x128xf32>
    %8 = tpu.matmul %5, %7, %cst {dimension_numbers = #tpu.dot_dimension_numbers<[1], [0], [0], [1], [0, 0, 1, 1], [], []>} : vector<2x256xbf16>, vector<256x128xbf16>, vector<2x128xf32> -> vector<2x128xf32>
    %9 = arith.addf %3, %8 : vector<2x128xf32>
    %c0_6 = arith.constant 0 : index
    %c0_7 = arith.constant 0 : index
    %10 = vector.load %arg5[%c0_6, %c0_7] : memref<2x128xf32, #tpu.memory_space<vmem>>, vector<2x128xf32>
    tpu.vector_store %arg5[%c0_6, %c0_7], %9 {strides = array<i32>} : memref<2x128xf32, #tpu.memory_space<vmem>>, vector<2x128xf32>,
    %c0_i32_8 = arith.constant 0 : i32
    %11 = arith.cmpi eq, %arg0, %c0_i32_8 : i32
    %12 = arith.extui %11 : i1 to i32
    %c0_i32_9 = arith.constant 0 : i32
    %13 = arith.cmpi ne, %12, %c0_i32_9 : i32
    scf.if %13 {
      %c0_10 = arith.constant 0 : index
      %c0_11 = arith.constant 0 : index
      %14 = vector.load %arg5[%c0_10, %c0_11] : memref<2x128xf32, #tpu.memory_space<vmem>>, vector<2x128xf32>
      %c0_12 = arith.constant 0 : index
      %c0_13 = arith.constant 0 : index
      %15 = vector.load %arg3[%c0_12, %c0_13] : memref<1x128xf32, #tpu.memory_space<vmem>>, vector<1x128xf32>
      %16 = vector.broadcast %15 : vector<1x128xf32> to vector<2x128xf32>
      %17 = arith.addf %14, %16 : vector<2x128xf32>
      %c0_14 = arith.constant 0 : index
      %c0_15 = arith.constant 0 : index
      %18 = vector.load %arg4[%c0_14, %c0_15] : memref<2x128xf32, #tpu.memory_space<vmem>>, vector<2x128xf32>
      tpu.vector_store %arg4[%c0_14, %c0_15], %17 {strides = array<i32>} : memref<2x128xf32, #tpu.memory_space<vmem>>, vector<2x128xf32>,
    } else {
    }
    return
  }
  func.func @transform_0(%arg0: i32) -> (i32, i32) {
    %c0_i32 = arith.constant 0 : i32
    %c0_i32_0 = arith.constant 0 : i32
    return %c0_i32, %arg0 : i32, i32
  }
  func.func @transform_1(%arg0: i32) -> (i32, i32) {
    %c0_i32 = arith.constant 0 : i32
    %c0_i32_0 = arith.constant 0 : i32
    return %arg0, %c0_i32 : i32, i32
  }
  func.func @transform_2(%arg0: i32) -> (i32, i32) {
    %c0_i32 = arith.constant 0 : i32
    %c0_i32_0 = arith.constant 0 : i32
    %c0_i32_1 = arith.constant 0 : i32
    return %c0_i32, %c0_i32_0 : i32, i32
  }
  func.func @transform_3(%arg0: i32) -> (i32, i32) {
    %c0_i32 = arith.constant 0 : i32
    %c0_i32_0 = arith.constant 0 : i32
    %c0_i32_1 = arith.constant 0 : i32
    return %c0_i32, %c0_i32_0 : i32, i32
  }
}

</mosaic_0001>

<bundles_post_ra>
// kernel: gpt2_classifier_forward.10
= control target key start
LH: loop header
LB: loop body
LE: loop exit
PB: predicated region body
PF: predicated region fallthrough
CT: control target
= control target key end

     0   :  { %s301_s12 = smov 0   ;;  %s327_s0 = inlined_call_operand.vmem [shape: f32[2,8,32], index: 0, kind: input, shape index: {}]   ;;  %s328_s1 = inlined_call_operand.vmem [shape: f32[1,32], index: 1, kind: input, shape index: {}]   ;;  %s329_s2 = inlined_call_operand.vmem [shape: f32[1,32], index: 2, kind: input, shape index: {}]   ;;  %s330_s3 = inlined_call_operand.vmem [shape: f32[2,8,32], index: 3, kind: output, shape index: {}]  }
   0x1 LB: > { %s252_s13 = sadd.s32 4294967295, %s279_s12   ;;  %p256_p0 = scmp.ge.s32.totalorder %s279_s12, 1  ;;  %s279_s12 = sphi %s301_s12, %s13_s12  }
   0x2   : > { %p136_p1 = scmp.lt.s32.totalorder %s279_s12, 3 }
   0x4   : > { %p137_p2 = pnand %p256_p0, %p136_p1 }
   0x5   : > { %p158_p3 = scmp.lt.s32.totalorder (!%p137_p2), %s252_s13, 1  ;;  %vm169_vm0 = vcmask (!%p137_p2), 261120   ;;  %v259_v11 = vld [vmem:[%s328_s1] ss:$0 sm:$0xff] (!%p137_p2) }
   0x6   : > { %140 = sbr.rel (%p137_p2) target bundleno = 331 (0x14b), region = 32  ;;  %v260_v13 = vld [vmem:[%s329_s2] ss:$0 sm:$0xff] (!%p137_p2) }
   0xd   : > { %s332_s13 = smov (!%p158_p3, %s252_s13), 1 }
   0xe   : > { %s257_s14 = sshll.u32 %s332_s13, 3 }
   0xf   : > { %s161_s17 = scalar_lea.vmem %s327_s0, %s257_s14  ;;  %s165_s24 = scalar_lea.vmem %s330_s3, %s257_s14 }
  0x10   : > { %v166_v0 = vld [vmem:[%s161_s17] sm:$0xff] }
  0x11   : > { %v170_v1 = vsel %vm169_vm0, %v166_v0, 0.0 }
  0x12   : > { %171 = vadd.xlane.f32.xlu0 %v170_v1 }
  0x9f   : > { %v172_v2 = vpop.xlane.xlu0 %171 }
  0xa0   : > { %v174_v3 = vmul.f32 0.03125, %v172_v2 }
  0xa2   : > { %v175_v4 = vsub.f32 %v166_v0, %v174_v3 }
  0xa4   : > { %v176_v5 = vmul.f32 %v175_v4, %v175_v4 }
  0xa6   : > { %v177_v6 = vsel %vm169_vm0, %v176_v5, 0.0 }
  0xa7   : > { %178 = vadd.xlane.f32.xlu0 %v177_v6 }
 0x134   : > { %v179_v7 = vpop.xlane.xlu0 %178 }
 0x135   : > { %v180_v8 = vmul.f32 0.03125, %v179_v7 }
 0x137   : > { %v181_v9 = vadd.f32 1e-05, %v180_v8 }
 0x139   : > { %271 = vrsqrt.f32 %v181_v9 }
 0x143   : > { %v272_v10 = vpop.eup %271 }
 0x144   : > { %v183_v12 = vmul.f32 %v272_v10, %v175_v4 }
 0x146   : > { %v190_v14 = vmul.f32 %v259_v11, %v183_v12 }
 0x148   : > { %v197_v15 = vadd.f32 %v260_v13, %v190_v14 }
 0x14a   : > { %198 = vst.msk [vmem:[%s165_s24] sm:$0xff] %vm169_vm0, %v197_v15 }
 0x14b PF: > { %s13_s12 = sadd.s32 1, %s279_s12  }
 0x14c   : > { %p10_p4 = scmp.ge.s32.totalorder %s13_s12, 4  }
 0x14e   :  { %12 = sbr.rel (!%p10_p4) target bundleno = 1 (0x1), region = 62 }

// kernel: gpt2_classifier_forward.11
= control target key start
LH: loop header
LB: loop body
LE: loop exit
PB: predicated region body
PF: predicated region fallthrough
CT: control target
= control target key end

     0   :  { %s339_s0 = inlined_call_operand.vmem [shape: f32[2,256], index: 0, kind: input, shape index: {}]   ;;  %s340_s1 = inlined_call_operand.vmem [shape: f32[256,128], index: 1, kind: input, shape index: {}]   ;;  %s341_s2 = inlined_call_operand.vmem [shape: f32[1,128], index: 2, kind: input, shape index: {}]   ;;  %s342_s3 = inlined_call_operand.hbm [shape: f32[2,128], index: 3, kind: output, shape index: {}]  }
   0x1   :  { %v52_v0 = vld [vmem:[%s340_s1 + $0x80] sm:$0xff]  ;;  %v53_v1 = vld [vmem:[%s340_s1 + $0x88] sm:$0xff]  ;;  %v54_v5 = vld [vmem:[%s340_s1 + $0x90] sm:$0xff] }
   0x2   :  { %v36_v2 = vld [vmem:[%s340_s1] sm:$0xff]  ;;  %v76_v3 = vpack.c.bf16 %v53_v1, %v52_v0  ;;  %v37_v4 = vld [vmem:[%s340_s1 + $0x8] sm:$0xff]  ;;  %v55_v6 = vld [vmem:[%s340_s1 + $0x98] sm:$0xff] }
   0x3   :  { %v68_v7 = vpack.c.bf16 %v37_v4, %v36_v2  ;;  %v77_v8 = vpack.c.bf16 %v55_v6, %v54_v5  ;;  %v38_v9 = vld [vmem:[%s340_s1 + $0x10] sm:$0xff]  ;;  %v39_v10 = vld [vmem:[%s340_s1 + $0x18] sm:$0xff]  ;;  %v56_v11 = vld [vmem:[%s340_s1 + $0xa0] sm:$0xff] }
   0x4   :  { %155 = vmatprep.subr.bf16.mxu0 %v76_v3  ;;  %v57_v12 = vld [vmem:[%s340_s1 + $0xa8] sm:$0xff]  ;;  %v69_v13 = vpack.c.bf16 %v39_v10, %v38_v9  ;;  %v40_v15 = vld [vmem:[%s340_s1 + $0x20] sm:$0xff]  ;;  %v58_v17 = vld [vmem:[%s340_s1 + $0xb0] sm:$0xff] }
   0x5   :  { %156 = vmatpush3.bf16.msra.mxu0 %v68_v7  ;;  %v78_v14 = vpack.c.bf16 %v57_v12, %v56_v11  ;;  %v41_v16 = vld [vmem:[%s340_s1 + $0x28] sm:$0xff]  ;;  %v59_v18 = vld [vmem:[%s340_s1 + $0xb8] sm:$0xff]  ;;  %v42_v21 = vld [vmem:[%s340_s1 + $0x30] sm:$0xff] }
   0x6   :  { %157 = vmatprep.subr.bf16.mxu0 %v77_v8  ;;  %v70_v19 = vpack.c.bf16 %v41_v16, %v40_v15  ;;  %v79_v20 = vpack.c.bf16 %v59_v18, %v58_v17  ;;  %v43_v22 = vld [vmem:[%s340_s1 + $0x38] sm:$0xff]  ;;  %v60_v23 = vld [vmem:[%s340_s1 + $0xc0] sm:$0xff]  ;;  %v61_v24 = vld [vmem:[%s340_s1 + $0xc8] sm:$0xff] }
   0x7   :  { %v153_v25 = vld.sshfl [vmem:[%s339_s0] sm:$0x33 pattern:$0x76325410] }
   0x8   :  { %v31_v26 = vcombine.high %v153_v25, %v153_v25 }
   0x9   :  { %158 = vmatpush3.bf16.msra.mxu0 %v69_v13 }
   0xa   :  { %159 = vmatprep.subr.bf16.mxu0 %v78_v14 }
   0xb   :  { %8 = vsyncpa [#allocation4], 0  ;;  %v71_v27 = vpack.c.bf16 %v43_v22, %v42_v21  ;;  %v80_v28 = vpack.c.bf16 %v61_v24, %v60_v23  ;;  %v44_v29 = vld [vmem:[%s340_s1 + $0x40] sm:$0xff]  ;;  %v45_v30 = vld [vmem:[%s340_s1 + $0x48] sm:$0xff]  ;;  %v35_v31 = vpack.c.bf16 %v31_v26, %v31_v26  ;;  %v34_v51 = vpack.c.bf16 %v153_v25, %v153_v25 }
   0xc   :  { %v62_v32 = vld [vmem:[%s340_s1 + $0xd0] sm:$0xff]  ;;  %v63_v33 = vld [vmem:[%s340_s1 + $0xd8] sm:$0xff]  ;;  %v72_v34 = vpack.c.bf16 %v45_v30, %v44_v29  ;;  %v64_v38 = vld [vmem:[%s340_s1 + $0xe0] sm:$0xff]  ;;  %v203_v52 = vmov 0.0  }
   0xd   :  { %160 = vmatpush3.bf16.msra.mxu0 %v70_v19  ;;  %116 = vmatprep.mubr.bf16.mxu0 %v35_v31  ;;  %v81_v35 = vpack.c.bf16 %v63_v33, %v62_v32  ;;  %v46_v36 = vld [vmem:[%s340_s1 + $0x50] sm:$0xff]  ;;  %v47_v37 = vld [vmem:[%s340_s1 + $0x58] sm:$0xff]  ;;  %v65_v39 = vld [vmem:[%s340_s1 + $0xe8] sm:$0xff]  ;;  %20 = vst [vmem:[#allocation2] sm:$0x3] %v203_v52 }
   0xe   :  { %161 = vmatprep.subr.bf16.mxu0 %v79_v20  ;;  %v73_v40 = vpack.c.bf16 %v47_v37, %v46_v36  ;;  %v82_v41 = vpack.c.bf16 %v65_v39, %v64_v38  ;;  %v48_v42 = vld [vmem:[%s340_s1 + $0x60] sm:$0xff]  ;;  %v49_v43 = vld [vmem:[%s340_s1 + $0x68] sm:$0xff]  ;;  %v66_v44 = vld [vmem:[%s340_s1 + $0xf0] sm:$0xff] }
   0xf   :  { %v67_v45 = vld [vmem:[%s340_s1 + $0xf8] sm:$0xff]  ;;  %v74_v46 = vpack.c.bf16 %v49_v43, %v48_v42  ;;  %v50_v48 = vld [vmem:[%s340_s1 + $0x70] sm:$0xff]  ;;  %v154_v60 = vld [vmem:[%s341_s2] ss:$0 sm:$0xff] }
  0x10   :  { %v83_v47 = vpack.c.bf16 %v67_v45, %v66_v44  ;;  %v51_v49 = vld [vmem:[%s340_s1 + $0x78] sm:$0xff]  ;;  %s204_s1 = smov [#allocation3]  }
  0x11   :  { %162 = vmatpush3.bf16.msra.mxu0 %v71_v27  ;;  %v75_v50 = vpack.c.bf16 %v51_v49, %v50_v48  ;;  %s145_s25 = sshll.u32 %s204_s1, 4  ;;  %s146_s25 = int_to_ptr.vmem [resolvable:$true] %s145_s25 }
  0x12   :  { %163 = vmatprep.subr.bf16.mxu0 %v80_v28  ;;  %s179_s26 = scalar_lea.vmem %s146_s25, 32  ;;  %p184_p1 = scmp.lt.s32.totalorder %s146_s25, %s146_s25 }
  0x13   :  { %p180_p0 = scmp.ne.s32.totalorder %s146_s25, %s179_s26  ;;  %p185_p2 = scmp.lt.s32.totalorder %s179_s26, %s179_s26 }
  0x14   :  { %v21_v54 = vld [vmem:[#allocation2] sm:$0x3] }
  0x15   :  { %164 = vmatpush3.bf16.msra.mxu0 %v72_v34  ;;  %p186_p3 = por %p185_p2, %p184_p1 }
  0x16   :  { %165 = vmatprep.subr.bf16.mxu0 %v81_v35 }
  0x17   :  { %p187_p4 = pnand %p186_p3, %p180_p0 }
  0x19   :  { %166 = vmatpush3.bf16.msra.mxu0 %v73_v40 }
  0x1a   :  { %167 = vmatprep.subr.bf16.mxu0 %v82_v41 }
  0x1d   :  { %168 = vmatpush3.bf16.msra.mxu0 %v74_v46 }
  0x1e   :  { %169 = vmatprep.subr.bf16.mxu0 %v83_v47 }
  0x21   :  { %170 = vmatpush3.bf16.msra.mxu0 %v75_v50 }
  0x24   :  { %117 = vmatmul.mubr.bf16.vlgmr.msra.gmra.mrb[0].mxu0 %v34_v51 }
  0xf7   :  { %v171_v53 = vpop.f32.mrb[0].mxu0 }
  0xf8   :  { %v172_v55 = vpop.f32.mrb[1].mxu0 }
  0xf9   :  { %v173_v56 = vadd.f32 %v172_v55, %v171_v53  ;;  %v174_v57 = vpop.f32.mrb[2].mxu0 }
  0xfa   :  { %v175_v58 = vpop.f32.mrb[3].mxu0 }
  0xfb   :  { %v124_v59 = vadd.f32 %v173_v56, %v21_v54 }
  0xfd   :  { %125 = vst [vmem:[#allocation2] sm:$0x3] %v124_v59 }
 0x104   :  { %v129_v61 = vld [vmem:[#allocation2] sm:$0x3] }
 0x105   :  { %v137_v62 = vadd.f32 %v154_v60, %v129_v61 }
 0x107   :  { %138 = vst [vmem:[#allocation3] sm:$0x3] %v137_v62 }
 0x108   :  { %190 = shalt.err (!%p187_p4)
}
 0x109   :  { %s191_s0 = scalar_lea.hbm %s342_s3, 32 }
 0x10a   :  { %p192_p5 = scmp.ne.s32.totalorder %s342_s3, %s191_s0  ;;  %p195_p6 = scmp.lt.u32.totalorder %s191_s0, %s342_s3 }
 0x10c   :  { %p197_p7 = pnand %p195_p6, %p192_p5 }
 0x10e   :  { %200 = shalt.err (!%p197_p7)
}
 0x10f   :  { %148 = dma.vmem_to_hbm [thread:$0]  %s146_s25, 32, %s342_s3, [#allocation4]  }
 0x110   :  { %201 = dma.done.wait [#allocation4], 32  }
 0x111   :  { %202 = vsyncadd [#allocation4], 4294967264 }
 0x112   :  { %152 = vsyncpa [#allocation4], 1 }

// kernel: gpt2_classifier_forward.7
= control target key start
LH: loop header
LB: loop body
LE: loop exit
PB: predicated region body
PF: predicated region fallthrough
CT: control target
= control target key end

     0   :  { %s618_s24 = smov 0   ;;  %s723_s0 = inlined_call_operand.vmem [shape: f32[2,8,32], index: 0, kind: input, shape index: {}]   ;;  %s724_s1 = inlined_call_operand.vmem [shape: f32[1,32], index: 1, kind: input, shape index: {}]   ;;  %s725_s2 = inlined_call_operand.vmem [shape: f32[1,32], index: 2, kind: input, shape index: {}]   ;;  %s726_s3 = inlined_call_operand.vmem [shape: f32[32,128], index: 3, kind: input, shape index: {}]   ;;  %s727_s4 = inlined_call_operand.vmem [shape: f32[1,128], index: 4, kind: input, shape index: {}]   ;;  %s728_s5 = inlined_call_operand.vmem [shape: f32[128,32], index: 5, kind: input, shape index: {}]   ;;  %s729_s6 = inlined_call_operand.vmem [shape: f32[1,32], index: 6, kind: input, shape index: {}]   ;;  %s730_s7 = inlined_call_operand.vmem [shape: f32[2,8,32], index: 7, kind: output, shape index: {}]  }
   0x1 LB: > { %s500_s25 = sadd.s32 4294967295, %s574_s24   ;;  %p504_p0 = scmp.ge.s32.totalorder %s574_s24, 1  ;;  %s574_s24 = sphi %s618_s24, %s17_s24  }
   0x2   : > { %p236_p1 = scmp.lt.s32.totalorder %s574_s24, 3 }
   0x4   : > { %p237_p2 = pnand %p504_p0, %p236_p1 }
   0x5   : > { %p266_p3 = scmp.lt.s32.totalorder (!%p237_p2), %s500_s25, 1  ;;  %vm278_vm0 = vcmask (!%p237_p2), 261120   ;;  %v308_v7 = vld [vmem:[%s726_s3] sm:$0xff] (!%p237_p2)  ;;  %v309_v8 = vld [vmem:[%s726_s3 + $0x8] sm:$0xff] (!%p237_p2)  ;;  %v576_v10 = vmov (!%p237_p2), 0.0   ;;  %v310_v11 = vld [vmem:[%s726_s3 + $0x10] sm:$0xff] (!%p237_p2) }
   0x6   : > { %240 = sbr.rel (%p237_p2) target bundleno = 790 (0x316), region = 48  ;;  %v312_v9 = vpack.c.bf16 (!%p237_p2), %v309_v8, %v308_v7  ;;  %526 = vmatprep.subr.bf16.mxu0 (!%p237_p2), %v576_v10  ;;  %v311_v12 = vld [vmem:[%s726_s3 + $0x18] sm:$0xff] (!%p237_p2)  ;;  %534 = vmatprep.subr.bf16.mxu1 (!%p237_p2), %v576_v10  ;;  %vm577_vm1 = vmmov (!%p237_p2), 0   ;;  %v374_v14 = vld [vmem:[%s728_s5] sm:$0xff] (!%p237_p2)  ;;  %v375_v15 = vld [vmem:[%s728_s5 + $0x8] sm:$0xff] (!%p237_p2) }
   0x7   : > { %v313_v13 = vpack.c.bf16 (!%p237_p2), %v311_v12, %v310_v11  ;;  %530 = vmatprep.mubr.msk.bf16.mxu0 (!%p237_p2), %vm577_vm1, %v576_v10  ;;  %550 = vmatprep.mubr.msk.bf16.mxu1 (!%p237_p2), %vm577_vm1, %v576_v10  ;;  %v390_v16 = vpack.c.bf16 (!%p237_p2), %v375_v15, %v374_v14  ;;  %v507_v21 = vld [vmem:[%s724_s1] ss:$0 sm:$0xff] (!%p237_p2)  ;;  %v376_v27 = vld [vmem:[%s728_s5 + $0x10] sm:$0xff] (!%p237_p2)  ;;  %v377_v28 = vld [vmem:[%s728_s5 + $0x18] sm:$0xff] (!%p237_p2) }
   0x8   : > { %527 = vmatpush3.bf16.msra.mxu0 (!%p237_p2), %v312_v9  ;;  %v508_v23 = vld [vmem:[%s725_s2] ss:$0 sm:$0xff] (!%p237_p2)  ;;  %v391_v29 = vpack.c.bf16 (!%p237_p2), %v377_v28, %v376_v27  ;;  %v379_v31 = vld [vmem:[%s728_s5 + $0x28] sm:$0xff] (!%p237_p2)  ;;  %v380_v33 = vld [vmem:[%s728_s5 + $0x30] sm:$0xff] (!%p237_p2) }
   0x9   : > { %528 = vmatprep.subr.bf16.mxu0 (!%p237_p2), %v576_v10  ;;  %535 = vmatpush3.bf16.msra.mxu1 (!%p237_p2), %v390_v16  ;;  %v378_v30 = vld [vmem:[%s728_s5 + $0x20] sm:$0xff] (!%p237_p2)  ;;  %v381_v34 = vld [vmem:[%s728_s5 + $0x38] sm:$0xff] (!%p237_p2)  ;;  %v383_v37 = vld [vmem:[%s728_s5 + $0x48] sm:$0xff] (!%p237_p2) }
   0xa   : > { %536 = vmatprep.subr.bf16.mxu1 (!%p237_p2), %v576_v10  ;;  %v392_v32 = vpack.c.bf16 (!%p237_p2), %v379_v31, %v378_v30  ;;  %v393_v35 = vpack.c.bf16 (!%p237_p2), %v381_v34, %v380_v33  ;;  %v382_v36 = vld [vmem:[%s728_s5 + $0x40] sm:$0xff] (!%p237_p2)  ;;  %v384_v39 = vld [vmem:[%s728_s5 + $0x50] sm:$0xff] (!%p237_p2)  ;;  %v385_v40 = vld [vmem:[%s728_s5 + $0x58] sm:$0xff] (!%p237_p2) }
   0xb   : > { %v394_v38 = vpack.c.bf16 (!%p237_p2), %v383_v37, %v382_v36  ;;  %v395_v41 = vpack.c.bf16 (!%p237_p2), %v385_v40, %v384_v39  ;;  %v386_v42 = vld [vmem:[%s728_s5 + $0x60] sm:$0xff] (!%p237_p2)  ;;  %v387_v43 = vld [vmem:[%s728_s5 + $0x68] sm:$0xff] (!%p237_p2)  ;;  %v388_v45 = vld [vmem:[%s728_s5 + $0x70] sm:$0xff] (!%p237_p2) }
   0xc   : > { %529 = vmatpush3.bf16.msra.mxu0 (!%p237_p2), %v313_v13  ;;  %v396_v44 = vpack.c.bf16 (!%p237_p2), %v387_v43, %v386_v42  ;;  %v389_v46 = vld [vmem:[%s728_s5 + $0x78] sm:$0xff] (!%p237_p2)  ;;  %v509_v48 = vld [vmem:[%s727_s4] ss:$0 sm:$0xff] (!%p237_p2) }
   0xd   : > { %s732_s25 = smov (!%p266_p3, %s500_s25), 1  ;;  %537 = vmatpush3.bf16.msra.mxu1 %v391_v29  ;;  %v397_v47 = vpack.c.bf16 %v389_v46, %v388_v45 }
   0xe   : > { %s505_s26 = sshll.u32 %s732_s25, 3  ;;  %538 = vmatprep.subr.bf16.mxu1 %v576_v10 }
   0xf   : > { %s269_s29 = scalar_lea.vmem %s723_s0, %s505_s26  ;;  %s273_s17 = scalar_lea.vmem %s730_s7, %s505_s26 }
  0x10   : > { %v634_v0 = vld [vmem:[%s269_s29] sm:$0xff] }
  0x11   : > { %v279_v1 = vsel %vm278_vm0, %v634_v0, 0.0  ;;  %539 = vmatpush3.bf16.msra.mxu1 %v392_v32 }
  0x12   : > { %280 = vadd.xlane.f32.xlu0 %v279_v1  ;;  %540 = vmatprep.subr.bf16.mxu1 %v576_v10  ;;  %v511_v1 = vld [vmem:[%s729_s6] ss:$0 sm:$0xff] }
  0x15   : > { %541 = vmatpush3.bf16.msra.mxu1 %v393_v35 }
  0x16   : > { %542 = vmatprep.subr.bf16.mxu1 %v576_v10 }
  0x19   : > { %543 = vmatpush3.bf16.msra.mxu1 %v394_v38 }
  0x1a   : > { %544 = vmatprep.subr.bf16.mxu1 %v576_v10 }
  0x1d   : > { %545 = vmatpush3.bf16.msra.mxu1 %v395_v41 }
  0x1e   : > { %546 = vmatprep.subr.bf16.mxu1 %v576_v10 }
  0x21   : > { %547 = vmatpush3.bf16.msra.mxu1 %v396_v44 }
  0x22   : > { %548 = vmatprep.subr.bf16.mxu1 %v576_v10 }
  0x25   : > { %549 = vmatpush3.bf16.msra.mxu1 %v397_v47 }
  0x9f   : > { %v281_v2 = vpop.xlane.xlu0 %280 }
  0xa0   : > { %v283_v3 = vmul.f32 0.03125, %v281_v2 }
  0xa2   : > { %v284_v4 = vsub.f32 %v634_v0, %v283_v3 }
  0xa4   : > { %v285_v5 = vmul.f32 %v284_v4, %v284_v4 }
  0xa6   : > { %v286_v6 = vsel %vm278_vm0, %v285_v5, 0.0 }
  0xa7   : > { %287 = vadd.xlane.f32.xlu0 %v286_v6 }
 0x134   : > { %v288_v17 = vpop.xlane.xlu0 %287 }
 0x135   : > { %v289_v18 = vmul.f32 0.03125, %v288_v17 }
 0x137   : > { %v290_v19 = vadd.f32 1e-05, %v289_v18 }
 0x139   : > { %564 = vrsqrt.f32 %v290_v19 }
 0x143   : > { %v565_v20 = vpop.eup %564 }
 0x144   : > { %v292_v22 = vmul.f32 %v565_v20, %v284_v4 }
 0x146   : > { %v299_v24 = vmul.f32 %v507_v21, %v292_v22 }
 0x148   : > { %v306_v25 = vadd.f32 %v508_v23, %v299_v24 }
 0x14a   : > { %v307_v26 = vpack.c.bf16 %v306_v25, %v306_v25 }
 0x14c   : > { %531 = vmatmul.mubr.msk.bf16.vlgmr.msra.gmra.mrb[0].mxu0 %vm278_vm0, %v307_v26 }
 0x21f   : > { %v358_v49 = vpop.f32.mrb[0].mxu0 }
 0x220   : > { %v359_v50 = vadd.f32 %v509_v48, %v358_v49  ;;  %v532_v51 = vpop.f32.mrb[1].mxu0 }
 0x221   : > { %v361_v52 = vpop.f32.mrb[2].mxu0 }
 0x222   : > { %v365_v53 = vmul.f32 0.044715, %v359_v50  ;;  %v533_v54 = vpop.f32.mrb[3].mxu0  ;;  %v364_v60 = vmul.f32 0.5, %v359_v50 }
 0x224   : > { %v366_v55 = vmul.f32 %v365_v53, %v359_v50 }
 0x226   : > { %v367_v56 = vmul.f32 %v366_v55, %v359_v50 }
 0x228   : > { %v368_v57 = vadd.f32 %v367_v56, %v359_v50 }
 0x22a   : > { %v369_v58 = vmul.f32 0.7978846, %v368_v57 }
 0x22c   : > { %566 = vtanh.f32 %v369_v58 }
 0x236   : > { %v567_v59 = vpop.eup %566 }
 0x237   : > { %v371_v61 = vadd.f32 1.0, %v567_v59 }
 0x239   : > { %v372_v62 = vmul.f32 %v371_v61, %v364_v60 }
 0x23b   : > { %v373_v63 = vpack.c.bf16 %v372_v62, %v372_v62 }
 0x23d   : > { %551 = vmatmul.mubr.bf16.vlgmr.msra.gmra.mrb[0].mxu1 %v373_v63 }
 0x310   : > { %v439_v2 = vpop.f32.mrb[0].mxu1 }
 0x311   : > { %v440_v3 = vadd.f32 %v511_v1, %v439_v2  ;;  %v552_v4 = vpop.f32.mrb[1].mxu1 }
 0x312   : > { %v442_v5 = vpop.f32.mrb[2].mxu1 }
 0x313   : > { %v445_v6 = vadd.f32 %v440_v3, %v634_v0  ;;  %v553_v7 = vpop.f32.mrb[3].mxu1 }
 0x315   : > { %446 = vst.msk [vmem:[%s273_s17] sm:$0xff] %vm278_vm0, %v445_v6 }
 0x316 PF: > { %s17_s24 = sadd.s32 1, %s574_s24  }
 0x317   : > { %p14_p4 = scmp.ge.s32.totalorder %s17_s24, 4  }
 0x319   :  { %16 = sbr.rel (!%p14_p4) target bundleno = 1 (0x1), region = 78 }

// kernel: gpt2_classifier_forward.6
= control target key start
LH: loop header
LB: loop body
LE: loop exit
PB: predicated region body
PF: predicated region fallthrough
CT: control target
= control target key end

     0   :  { %s1165_s24 = smov 0   ;;  %s1306_s0 = inlined_call_operand.vmem [shape: f32[2,8,32], index: 0, kind: input, shape index: {}]   ;;  %s1307_s1 = inlined_call_operand.vmem [shape: f32[1,32], index: 1, kind: input, shape index: {}]   ;;  %s1308_s2 = inlined_call_operand.vmem [shape: f32[1,32], index: 2, kind: input, shape index: {}]   ;;  %s1309_s3 = inlined_call_operand.vmem [shape: f32[32,96], index: 3, kind: input, shape index: {}]   ;;  %s1310_s4 = inlined_call_operand.vmem [shape: f32[1,96], index: 4, kind: input, shape index: {}]   ;;  %s1311_s5 = inlined_call_operand.vmem [shape: f32[32,32], index: 5, kind: input, shape index: {}]   ;;  %s1312_s6 = inlined_call_operand.vmem [shape: f32[1,32], index: 6, kind: input, shape index: {}]   ;;  %s1313_s7 = inlined_call_operand.vmem [shape: f32[2,8,32], index: 7, kind: output, shape index: {}]  }
   0x1 LB: > { %s950_s25 = sadd.s32 4294967295, %s1107_s24   ;;  %p954_p0 = scmp.ge.s32.totalorder %s1107_s24, 1  ;;  %s1107_s24 = sphi %s1165_s24, %s17_s24  }
   0x2   : > { %p236_p1 = scmp.lt.s32.totalorder %s1107_s24, 3 }
   0x4   : > { %p237_p2 = pnand %p954_p0, %p236_p1 }
   0x5   : > { %p266_p3 = scmp.lt.s32.totalorder (!%p237_p2), %s950_s25, 1  ;;  %vm278_vm0 = vcmask (!%p237_p2), 261120   ;;  %v308_v7 = vld [vmem:[%s1309_s3] sm:$0xff] (!%p237_p2)  ;;  %v309_v8 = vld [vmem:[%s1309_s3 + $0x8] sm:$0xff] (!%p237_p2)  ;;  %v310_v9 = vld [vmem:[%s1309_s3 + $0x10] sm:$0xff] (!%p237_p2)  ;;  %v1109_v10 = vmov (!%p237_p2), 0.0   ;;  %v364_v44 = vlaneseq (!%p237_p2) }
   0x6   : > { %240 = sbr.rel (%p237_p2) target bundleno = 1815 (0x717), region = 48  ;;  %995 = vmatprep.subr.bf16.mxu0 (!%p237_p2), %v1109_v10  ;;  %v312_v11 = vpack.c.bf16 (!%p237_p2), %v309_v8, %v308_v7  ;;  %v311_v12 = vld [vmem:[%s1309_s3 + $0x18] sm:$0xff] (!%p237_p2)  ;;  %vm1110_vm1 = vmmov (!%p237_p2), 0   ;;  %1003 = vmatprep.subr.bf16.mxu1 (!%p237_p2), %v1109_v10  ;;  %v957_v18 = vld [vmem:[%s1307_s1] ss:$0 sm:$0xff] (!%p237_p2)  ;;  %s1111_s21 = smov (!%p237_p2), 96  }
   0x7   : > { %999 = vmatprep.mubr.msk.bf16.mxu0 (!%p237_p2), %vm1110_vm1, %v1109_v10  ;;  %1005 = vmatprep.mubr.msk.bf16.mxu1 (!%p237_p2), %vm1110_vm1, %v1109_v10  ;;  %v313_v13 = vpack.c.bf16 (!%p237_p2), %v311_v12, %v310_v9  ;;  %v958_v20 = vld [vmem:[%s1308_s2] ss:$0 sm:$0xff] (!%p237_p2)  ;;  %s1112_s22 = smov (!%p237_p2), 120   ;;  %s1113_s23 = smov (!%p237_p2), 88   ;;  %vm375_vm2 = vcmask (!%p237_p2), 64512   ;;  %v365_v45 = vshrl.u32 (!%p237_p2), %v364_v44, 7 }
   0x8   : > { %996 = vmatpush3.bf16.msra.mxu0 (!%p237_p2), %v312_v11  ;;  %v959_v24 = vld [vmem:[%s1310_s4] ss:$0 sm:$0xff] (!%p237_p2)  ;;  %s1114_s27 = smov (!%p237_p2), 80   ;;  %s1115_s28 = smov (!%p237_p2), 112   ;;  %v367_v46 = vand.u32 (!%p237_p2), 127, %v364_v44  ;;  %vm440_vm4 = vcmask (!%p237_p2), 1043456  }
   0x9   : > { %997 = vmatprep.subr.bf16.mxu0 (!%p237_p2), %v1109_v10  ;;  %s1117_s30 = smov (!%p237_p2), 104   ;;  %s1118_s8 = smov (!%p237_p2), 64   ;;  %vm601_vm5 = vcmask (!%p237_p2), 130112   ;;  %vm718_vm6 = vcmask (!%p237_p2), 195712   ;;  %vm835_vm7 = vcmask (!%p237_p2), 261312  }
   0xa   : > { %vm368_vm3 = vcmp.le.s32.totalorder (!%p237_p2), %v367_v46, %v365_v45  ;;  %s1119_s9 = smov (!%p237_p2), 56   ;;  %s1120_s10 = smov (!%p237_p2), 48  }
   0xb   : > { %s1121_s11 = smov (!%p237_p2), 40   ;;  %s1122_s12 = smov (!%p237_p2), 8  }
   0xc   : > { %998 = vmatpush3.bf16.msra.mxu0 (!%p237_p2), %v313_v13 }
   0xd   : > { %s1315_s25 = smov (!%p266_p3, %s950_s25), 1  ;;  %1009 = vmatprep.subr.bf16.mxu0 %v1109_v10 }
   0xe   : > { %s955_s26 = sshll.u32 %s1315_s25, 3 }
   0xf   : > { %s269_s29 = scalar_lea.vmem %s1306_s0, %s955_s26 }
  0x10   : > { %v1181_v0 = vld [vmem:[%s269_s29] sm:$0xff]  ;;  %s1116_s29 = smov 72  }
  0x11   : > { %v279_v1 = vsel %vm278_vm0, %v1181_v0, 0.0 }
  0x12   : > { %280 = vadd.xlane.f32.xlu0 %v279_v1 }
  0x9f   : > { %v281_v2 = vpop.xlane.xlu0 %280 }
  0xa0   : > { %v283_v3 = vmul.f32 0.03125, %v281_v2 }
  0xa2   : > { %v284_v4 = vsub.f32 %v1181_v0, %v283_v3 }
  0xa4   : > { %v285_v5 = vmul.f32 %v284_v4, %v284_v4 }
  0xa6   : > { %v286_v6 = vsel %vm278_vm0, %v285_v5, 0.0 }
  0xa7   : > { %287 = vadd.xlane.f32.xlu0 %v286_v6 }
 0x134   : > { %v288_v14 = vpop.xlane.xlu0 %287 }
 0x135   : > { %v289_v15 = vmul.f32 0.03125, %v288_v14 }
 0x137   : > { %v290_v16 = vadd.f32 1e-05, %v289_v15 }
 0x139   : > { %1083 = vrsqrt.f32 %v290_v16 }
 0x143   : > { %v1084_v17 = vpop.eup %1083 }
 0x144   : > { %v292_v19 = vmul.f32 %v1084_v17, %v284_v4 }
 0x146   : > { %v299_v21 = vmul.f32 %v957_v18, %v292_v19 }
 0x148   : > { %v306_v22 = vadd.f32 %v958_v20, %v299_v21 }
 0x14a   : > { %v307_v23 = vpack.c.bf16 %v306_v22, %v306_v22 }
 0x14c   : > { %1000 = vmatmul.mubr.msk.bf16.vlgmr.msra.gmra.mrb[0].mxu0 %vm278_vm0, %v307_v23 }
 0x14d   : > { %1011 = vmatprep.mubr.msk.bf16.mxu0 %vm1110_vm1, %v1109_v10 }
 0x21f   : > { %v358_v25 = vpop.f32.mrb[0].mxu0 }
 0x220   : > { %v359_v26 = vadd.f32 %v959_v24, %v358_v25  ;;  %v1001_v27 = vpop.f32.mrb[1].mxu0 }
 0x221   : > { %v361_v28 = vpop.f32.mrb[2].mxu0 }
 0x222   : > { %v369_v29 = vmul.f32 0.35355338, %v359_v26  ;;  %v1219_v30 = vpack.c.bf16 %v359_v26, %v359_v26  ;;  %v1002_v31 = vpop.f32.mrb[3].mxu0 }
 0x224   : > { %v370_v32 = vpack.c.bf16 %v369_v29, %v369_v29  ;;  %373 = vrot.lane.b32.xlu1 %v1219_v30, %s1111_s21  ;;  %s1123_s21 = smov 16  }
 0x226   : > { %486 = vrot.lane.b32.xlu0 %v370_v32, %s1112_s22  ;;  %s1124_s22 = smov 24  }
 0x228   : > { %488 = vrot.lane.b32.xlu1 %v1219_v30, %s1113_s23 }
 0x22c   : > { %605 = vrot.lane.b32.xlu1 %v1219_v30, %s1114_s27 }
 0x230   : > { %603 = vrot.lane.b32.xlu1 %v370_v32, %s1115_s28 }
 0x234   : > { %722 = vrot.lane.b32.xlu1 %v1219_v30, %s1116_s29 }
 0x238   : > { %720 = vrot.lane.b32.xlu1 %v370_v32, %s1117_s30  ;;  %s273_s30 = scalar_lea.vmem %s1313_s7, %s955_s26 }
 0x296   : > { %v374_v33 = vpop.permute.xlu1 %373 }
 0x297   : > { %v380_v34 = vsel %vm375_vm2, %v374_v33, 0 }
 0x298   : > { %1004 = vmatpush3.bf16.xpose.msra.mxu1 %v380_v34  ;;  %v487_v38 = vpop.permute.xlu0 %486 }
 0x299   : > { %1015 = vmatprep.subr.bf16.mxu1 %v1109_v10 }
 0x29a   : > { %v489_v35 = vpop.permute.xlu1 %488 }
 0x29b   : > { %v494_v36 = vsel %vm375_vm2, %v489_v35, 0 }
 0x29e   : > { %v606_v37 = vpop.permute.xlu1 %605 }
 0x29f   : > { %1006 = vmatmul.mubr.msk.bf16.vlgmr.msra.gmra.mrb[0].mxu1 %vm375_vm2, %v370_v32  ;;  %v611_v40 = vsel %vm375_vm2, %v606_v37, 0 }
 0x2a0   : > { %1016 = vmatpush3.bf16.xpose.msra.mxu1 %v494_v36  ;;  %1017 = vmatprep.mubr.msk.bf16.mxu1 %vm1110_vm1, %v1109_v10 }
 0x2a1   : > { %1027 = vmatprep.subr.bf16.mxu1 %v1109_v10 }
 0x2a2   : > { %v604_v39 = vpop.permute.xlu1 %603 }
 0x2a6   : > { %v723_v41 = vpop.permute.xlu1 %722 }
 0x2a7   : > { %1018 = vmatmul.mubr.msk.bf16.vlgmr.msra.gmra.mrb[4].mxu1 %vm375_vm2, %v487_v38  ;;  %v728_v42 = vsel %vm375_vm2, %v723_v41, 0 }
 0x2a8   : > { %1028 = vmatpush3.bf16.xpose.msra.mxu1 %v611_v40  ;;  %1029 = vmatprep.mubr.msk.bf16.mxu1 %vm1110_vm1, %v1109_v10 }
 0x2a9   : > { %1039 = vmatprep.subr.bf16.mxu1 %v1109_v10 }
 0x2aa   : > { %v721_v43 = vpop.permute.xlu1 %720 }
 0x2af   : > { %1030 = vmatmul.mubr.msk.bf16.vlgmr.msra.gmra.mrb[8].mxu1 %vm375_vm2, %v604_v39 }
 0x2b0   : > { %1040 = vmatpush3.bf16.xpose.msra.mxu1 %v728_v42  ;;  %1041 = vmatprep.mubr.msk.bf16.mxu1 %vm1110_vm1, %v1109_v10 }
 0x2b1   : > { %1051 = vmatprep.subr.bf16.mxu1 %v1109_v10 }
 0x2b7   : > { %1042 = vmatmul.mubr.msk.bf16.vlgmr.msra.gmra.mrb[12].mxu1 %vm375_vm2, %v721_v43 }
 0x2b8   : > { %1055 = vmatprep.mubr.msk.bf16.mxu1 %vm1110_vm1, %v1109_v10 }
 0x372   : > { %v416_v47 = vpop.f32.mrb[0].mxu1 }
 0x373   : > { %v422_v48 = vsel %vm368_vm3, %v416_v47, -1e+30  ;;  %v1007_v49 = vpop.f32.mrb[1].mxu1 }
 0x374   : > { %v419_v50 = vpop.f32.mrb[2].mxu1  ;;  %v423_v51 = vsel %vm375_vm2, %v422_v48, -inf }
 0x375   : > { %424 = vmax.xlane.f32.xlu1 %v423_v51  ;;  %v1008_v52 = vpop.f32.mrb[3].mxu1 }
 0x37a   : > { %v530_v53 = vpop.f32.mrb[4].mxu1 }
 0x37b   : > { %v536_v54 = vsel %vm368_vm3, %v530_v53, -1e+30  ;;  %v1019_v55 = vpop.f32.mrb[5].mxu1 }
 0x37c   : > { %v533_v56 = vpop.f32.mrb[6].mxu1  ;;  %v537_v57 = vsel %vm375_vm2, %v536_v54, -inf }
 0x37d   : > { %538 = vmax.xlane.f32.xlu0 %v537_v57  ;;  %v1020_v58 = vpop.f32.mrb[7].mxu1 }
 0x382   : > { %v647_v59 = vpop.f32.mrb[8].mxu1 }
 0x383   : > { %v653_v60 = vsel %vm368_vm3, %v647_v59, -1e+30  ;;  %v1031_v61 = vpop.f32.mrb[9].mxu1 }
 0x384   : > { %v650_v62 = vpop.f32.mrb[10].mxu1  ;;  %v654_v63 = vsel %vm375_vm2, %v653_v60, -inf  ;;  %v839_v61 = vld [vmem:[%s1311_s5] sm:$0xff] }
 0x385   : > { %655 = vmax.xlane.f32.xlu1 %v654_v63  ;;  %v1032_v1 = vpop.f32.mrb[11].mxu1  ;;  %v840_v62 = vld [vmem:[%s1311_s5 + $0x8] sm:$0xff]  ;;  %v841_v63 = vld [vmem:[%s1311_s5 + $0x10] sm:$0xff] }
 0x386   : > { %v843_v1 = vpack.c.bf16 %v840_v62, %v839_v61 }
 0x388   : > { %1052 = vmatpush3.bf16.msra.mxu1 %v843_v1 }
 0x389   : > { %1053 = vmatprep.subr.bf16.mxu1 %v1109_v10 }
 0x38a   : > { %v764_v2 = vpop.f32.mrb[12].mxu1 }
 0x38b   : > { %v770_v3 = vsel %vm368_vm3, %v764_v2, -1e+30  ;;  %v1043_v4 = vpop.f32.mrb[13].mxu1  ;;  %v842_v2 = vld [vmem:[%s1311_s5 + $0x18] sm:$0xff] }
 0x38c   : > { %v767_v5 = vpop.f32.mrb[14].mxu1  ;;  %v771_v6 = vsel %vm375_vm2, %v770_v3, -inf }
 0x38d   : > { %772 = vmax.xlane.f32.xlu0 %v771_v6  ;;  %v1044_v7 = vpop.f32.mrb[15].mxu1 }
 0x402   : > { %v425_v8 = vpop.xlane.xlu1 %424 }
 0x403   : > { %v426_v9 = vsub.f32 %v422_v48, %v425_v8 }
 0x405   : > { %v427_v11 = vmul.f32 1.442695, %v426_v9 }
 0x407   : > { %1085 = vpow2.f32 %v427_v11 }
 0x40a   : > { %v539_v12 = vpop.xlane.xlu0 %538 }
 0x40b   : > { %v540_v13 = vsub.f32 %v536_v54, %v539_v12 }
 0x40d   : > { %v541_v14 = vmul.f32 1.442695, %v540_v13 }
 0x40f   : > { %1087 = vpow2.f32 %v541_v14 }
 0x411   : > { %v1086_v15 = vpop.eup %1085 }
 0x412   : > { %v429_v16 = vsel %vm375_vm2, %v1086_v15, 0.0  ;;  %v656_v24 = vpop.xlane.xlu1 %655 }
 0x413   : > { %430 = vadd.xlane.f32.xlu1 %v429_v16  ;;  %v657_v25 = vsub.f32 %v653_v60, %v656_v24 }
 0x415   : > { %v658_v26 = vmul.f32 1.442695, %v657_v25 }
 0x419   : > { %v1088_v17 = vpop.eup %1087 }
 0x41a   : > { %v773_v18 = vpop.xlane.xlu0 %772  ;;  %v543_v19 = vsel %vm375_vm2, %v1088_v17, 0.0 }
 0x41b   : > { %v774_v20 = vsub.f32 %v770_v3, %v773_v18  ;;  %544 = vadd.xlane.f32.xlu0 %v543_v19  ;;  %v844_v3 = vpack.c.bf16 %v842_v2, %v841_v63 }
 0x41d   : > { %v775_v21 = vmul.f32 1.442695, %v774_v20  ;;  %1054 = vmatpush3.bf16.msra.mxu1 %v844_v3 }
 0x41f   : > { %1089 = vpow2.f32 %v775_v21 }
 0x420   : > { %1091 = vpow2.f32 %v658_v26 }
 0x424   : > { %435 = vrot.lane.b32.xlu1 %v1219_v30, %s1118_s8 }
 0x429   : > { %v1090_v22 = vpop.eup %1089 }
 0x42a   : > { %v777_v23 = vsel %vm375_vm2, %v1090_v22, 0.0  ;;  %v1092_v27 = vpop.eup %1091 }
 0x42b   : > { %778 = vadd.xlane.f32.xlu0 %v777_v23  ;;  %v660_v28 = vsel %vm375_vm2, %v1092_v27, 0.0 }
 0x441   : > { %549 = vrot.lane.b32.xlu0 %v1219_v30, %s1119_s9 }
 0x448   : > { %661 = vadd.xlane.f32.xlu1 %v660_v28 }
 0x459   : > { %666 = vrot.lane.b32.xlu1 %v1219_v30, %s1120_s10 }
 0x45d   : > { %783 = vrot.lane.b32.xlu1 %v1219_v30, %s1121_s11 }
 0x4a0   : > { %v431_v29 = vpop.xlane.xlu1 %430 }
 0x4a1   : > { %1093 = vrcp.f32 %v431_v29 }
 0x4a4   : > { %v436_v31 = vpop.permute.xlu1 %435 }
 0x4a5   : > { %v442_v32 = vsel %vm440_vm4, %v436_v31, 0 }
 0x4a6   : > { %1010 = vmatpush3.bf16.msra.mxu0 %v442_v32 }
 0x4a7   : > { %1021 = vmatprep.subr.bf16.mxu0 %v1109_v10 }
 0x4a8   : > { %v545_v34 = vpop.xlane.xlu0 %544 }
 0x4a9   : > { %1095 = vrcp.f32 %v545_v34 }
 0x4ab   : > { %v1094_v33 = vpop.eup %1093 }
 0x4ac   : > { %v433_v35 = vmul.f32 %v1094_v33, %v1086_v15 }
 0x4ae   : > { %v434_v36 = vpack.c.bf16 %v433_v35, %v433_v35 }
 0x4b0   : > { %1012 = vmatmul.mubr.msk.bf16.vlgmr.msra.gmra.mrb[4].mxu0 %vm375_vm2, %v434_v36 }
 0x4b1   : > { %1023 = vmatprep.mubr.msk.bf16.mxu0 %vm1110_vm1, %v1109_v10 }
 0x4b3   : > { %v1096_v30 = vpop.eup %1095 }
 0x4b4   : > { %v547_v38 = vmul.f32 %v1096_v30, %v1088_v17  ;;  %v969_v17 = vld [vmem:[%s1312_s6] ss:$0 sm:$0xff] }
 0x4b6   : > { %v548_v41 = vpack.c.bf16 %v547_v38, %v547_v38 }
 0x4b8   : > { %v779_v37 = vpop.xlane.xlu0 %778 }
 0x4bc   : > { %v550_v39 = vpop.permute.xlu0 %549 }
 0x4bd   : > { %v555_v40 = vsel %vm440_vm4, %v550_v39, 0 }
 0x4be   : > { %1022 = vmatpush3.bf16.msra.mxu0 %v555_v40 }
 0x4bf   : > { %1033 = vmatprep.subr.bf16.mxu0 %v1109_v10 }
 0x4c1   : > { %1024 = vmatmul.mubr.msk.bf16.vlgmr.msra.gmra.mrb[8].mxu0 %vm375_vm2, %v548_v41 }
 0x4c2   : > { %1035 = vmatprep.mubr.msk.bf16.mxu0 %vm1110_vm1, %v1109_v10 }
 0x4d5   : > { %v662_v42 = vpop.xlane.xlu1 %661 }
 0x4d6   : > { %1097 = vrcp.f32 %v662_v42 }
 0x4d7   : > { %1099 = vrcp.f32 %v779_v37 }
 0x4d9   : > { %v667_v43 = vpop.permute.xlu1 %666 }
 0x4da   : > { %v672_v44 = vsel %vm440_vm4, %v667_v43, 0 }
 0x4db   : > { %1034 = vmatpush3.bf16.msra.mxu0 %v672_v44 }
 0x4dc   : > { %1045 = vmatprep.subr.bf16.mxu0 %v1109_v10 }
 0x4dd   : > { %v784_v47 = vpop.permute.xlu1 %783 }
 0x4de   : > { %v789_v50 = vsel %vm440_vm4, %v784_v47, 0 }
 0x4e0   : > { %v1098_v45 = vpop.eup %1097 }
 0x4e1   : > { %v664_v46 = vmul.f32 %v1098_v45, %v1092_v27  ;;  %v1100_v49 = vpop.eup %1099 }
 0x4e2   : > { %v781_v51 = vmul.f32 %v1100_v49, %v1090_v22 }
 0x4e3   : > { %v665_v48 = vpack.c.bf16 %v664_v46, %v664_v46 }
 0x4e4   : > { %v782_v52 = vpack.c.bf16 %v781_v51, %v781_v51 }
 0x4e5   : > { %1036 = vmatmul.mubr.msk.bf16.vlgmr.msra.gmra.mrb[12].mxu0 %vm375_vm2, %v665_v48 }
 0x4e6   : > { %1046 = vmatpush3.bf16.msra.mxu0 %v789_v50  ;;  %1047 = vmatprep.mubr.msk.bf16.mxu0 %vm1110_vm1, %v1109_v10 }
 0x4ed   : > { %1048 = vmatmul.mubr.msk.bf16.vlgmr.msra.gmra.mrb[16].mxu0 %vm375_vm2, %v782_v52 }
 0x583   : > { %v478_v53 = vpop.f32.mrb[4].mxu0 }
 0x584   : > { %484 = vst.msk [vmem:[#allocation2] sm:$0xff] %vm375_vm2, %v478_v53  ;;  %v1013_v54 = vpop.f32.mrb[5].mxu0 }
 0x585   : > { %v481_v55 = vpop.f32.mrb[6].mxu0 }
 0x586   : > { %v1014_v56 = vpop.f32.mrb[7].mxu0 }
 0x594   : > { %v591_v57 = vpop.f32.mrb[8].mxu0 }
 0x595   : > { %598 = vrot.lane.b32.xlu0 %v591_v57, %s1122_s12  ;;  %v1025_v58 = vpop.f32.mrb[9].mxu0 }
 0x596   : > { %v594_v59 = vpop.f32.mrb[10].mxu0 }
 0x597   : > { %v1026_v60 = vpop.f32.mrb[11].mxu0 }
 0x5b8   : > { %v708_v4 = vpop.f32.mrb[12].mxu0 }
 0x5b9   : > { %715 = vrot.lane.b32.xlu1 %v708_v4, %s1123_s21  ;;  %v1037_v5 = vpop.f32.mrb[13].mxu0 }
 0x5ba   : > { %v711_v6 = vpop.f32.mrb[14].mxu0 }
 0x5bb   : > { %v1038_v7 = vpop.f32.mrb[15].mxu0 }
 0x5c0   : > { %v825_v8 = vpop.f32.mrb[16].mxu0 }
 0x5c1   : > { %832 = vrot.lane.b32.xlu0 %v825_v8, %s1124_s22  ;;  %v1049_v9 = vpop.f32.mrb[17].mxu0 }
 0x5c2   : > { %v828_v11 = vpop.f32.mrb[18].mxu0 }
 0x5c3   : > { %v1050_v12 = vpop.f32.mrb[19].mxu0 }
 0x607   : > { %v599_v13 = vpop.permute.xlu0 %598 }
 0x608   : > { %602 = vst.msk [vmem:[#allocation2] sm:$0xff] %vm601_vm5, %v599_v13 }
 0x62b   : > { %v716_v14 = vpop.permute.xlu1 %715 }
 0x62c   : > { %719 = vst.msk [vmem:[#allocation2] sm:$0xff] %vm718_vm6, %v716_v14 }
 0x633   : > { %v833_v10 = vpop.permute.xlu0 %832 }
 0x634   : > { %836 = vst.msk [vmem:[#allocation2] sm:$0xff] %vm835_vm7, %v833_v10 }
 0x63b   : > { %v837_v15 = vld [vmem:[#allocation2] sm:$0xff] }
 0x63c   : > { %v838_v16 = vpack.c.bf16 %v837_v15, %v837_v15 }
 0x63e   : > { %1056 = vmatmul.mubr.msk.bf16.vlgmr.msra.gmra.mrb[16].mxu1 %vm278_vm0, %v838_v16 }
 0x711   : > { %v889_v18 = vpop.f32.mrb[16].mxu1 }
 0x712   : > { %v890_v19 = vadd.f32 %v969_v17, %v889_v18  ;;  %v1057_v20 = vpop.f32.mrb[17].mxu1 }
 0x713   : > { %v892_v21 = vpop.f32.mrb[18].mxu1 }
 0x714   : > { %v895_v22 = vadd.f32 %v890_v19, %v1181_v0  ;;  %v1058_v23 = vpop.f32.mrb[19].mxu1 }
 0x716   : > { %896 = vst.msk [vmem:[%s273_s30] sm:$0xff] %vm278_vm0, %v895_v22 }
 0x717 PF: > { %s17_s24 = sadd.s32 1, %s1107_s24  }
 0x718   : > { %p14_p4 = scmp.ge.s32.totalorder %s17_s24, 4  }
 0x71a   :  { %16 = sbr.rel (!%p14_p4) target bundleno = 1 (0x1), region = 78 }

</bundles_post_ra>
